<compile_context>
chip_gen: v7x
topology: tpu7x:2x2x1
jax: 0.10.0
libtpu: 0.0.40
codegen_flags: <defaults>
</compile_context>

<pallas_src>
import functools

import jax
import jax.numpy as jnp
from jax import lax
from jax.experimental import pallas as pl
from jax.experimental.pallas import tpu as pltpu


# ----------------------------------------------------------------------------
# Generation-dependent VMEM budget
# ----------------------------------------------------------------------------
def _vmem_limit_bytes():
    """v5e/v6e (128 MiB physical) -> 100 MiB, v7x (64 MiB) -> 48 MiB, fallback 64 MiB."""
    try:
        phys = int(pltpu.get_tpu_info().vmem_capacity_bytes)
    except Exception:
        phys = 64 * 1024 * 1024
    return max(32 * 1024 * 1024, min(phys - 16 * 1024 * 1024, 100 * 1024 * 1024))


_VMEM_LIMIT = _vmem_limit_bytes()
_STRIP_BUDGET = int(0.65 * _VMEM_LIMIT)


# ----------------------------------------------------------------------------
# Pallas kernel: fused 3x3 conv (pad=1) + bias + ReLU (+ optional 2x2/2 pool)
# ----------------------------------------------------------------------------
def _conv3x3_kernel(x_ref, halo_ref, w_ref, b_ref, o_ref, slab_ref, acc_ref,
                    *, th, width, pool):
    """One (cout-tile, image, row-strip) grid step.

    x_ref    : (1, th, width, Cin)      bf16  un-padded activation row strip
    halo_ref : (1, 2, width, Cin)       bf16  rows (strip_top-1, strip_bot+1); zeros at image border
    w_ref    : (3, 3*Cin, TN)           bf16  per-ky weights, K index = kx*Cin + cin
    b_ref    : (1, TN)                  f32
    o_ref    : (1, THo, Wo, TN)         bf16
    slab_ref : ((th+2)*width, 3*Cin)    bf16  kx-shifted, row-flattened slabs (scratch)
    acc_ref  : (th*width, TN)           f32   accumulator (scratch)
    """
    cin = x_ref.shape[-1]
    xv = x_ref[0]            # (th, width, cin)
    hv = halo_ref[0]         # (2, width, cin)

    def shifted(v, kx):
        # v: (rows, width, cin) -> kx-shifted along width, flattened to (rows*width, cin)
        if kx == 0:          # output column x reads input column x-1 (zero at x=0)
            v = jnp.concatenate([jnp.zeros_like(v[:, :1]), v[:, :-1]], axis=1)
        elif kx == 2:        # output column x reads input column x+1 (zero at x=W-1)
            v = jnp.concatenate([v[:, 1:], jnp.zeros_like(v[:, :1])], axis=1)
        return v.reshape(v.shape[0] * width, cin)

    # Build the three kx-shifted slabs ONCE per strip (3 copies instead of 9
    # per-tap materializations).  Slab row a = padded-strip row a:
    #   a = 0 -> top halo, a in [1, th] -> strip rows, a = th+1 -> bottom halo.
    for kx in range(3):
        c0 = kx * cin
        slab_ref[0:width, c0:c0 + cin] = shifted(hv[0:1], kx)
        slab_ref[width:(th + 1) * width, c0:c0 + cin] = shifted(xv, kx)
        slab_ref[(th + 1) * width:(th + 2) * width, c0:c0 + cin] = shifted(hv[1:2], kx)

    # 3 MXU dots with K = 3*Cin; each ky tap is a contiguous row-slice view.
    m = th * width
    acc_ref[...] = jnp.dot(slab_ref[0:m, :], w_ref[0],
                           preferred_element_type=jnp.float32)
    acc_ref[...] += jnp.dot(slab_ref[width:width + m, :], w_ref[1],
                            preferred_element_type=jnp.float32)
    acc_ref[...] += jnp.dot(slab_ref[2 * width:2 * width + m, :], w_ref[2],
                            preferred_element_type=jnp.float32)

    y = jnp.maximum(acc_ref[...] + b_ref[...], 0.0)       # bias + ReLU, one fused pass
    tn = o_ref.shape[-1]

    if pool is not None:
        # 2x2 stride-2 pool fused into the epilogue (lane dim untouched).
        y = y.reshape(th, width // 2, 2, tn)
        y = jnp.max(y, axis=2) if pool == "max" else jnp.sum(y, axis=2)
        y = y.reshape(th // 2, 2, width // 2, tn)
        y = jnp.max(y, axis=1) if pool == "max" else jnp.sum(y, axis=1) * 0.25
        o_ref[0] = y.astype(o_ref.dtype)
    else:
        o_ref[0] = y.reshape(th, width, tn).astype(o_ref.dtype)


# ----------------------------------------------------------------------------
# Strip sizing and halo construction
# ----------------------------------------------------------------------------
def _pick_strip(h, width, cin, tn, pooled, budget, max_th=None):
    def est(th):
        tho, wo = (th // 2, width // 2) if pooled else (th, width)
        b = 2 * th * width * cin * 2           # input strip (double buffered)
        b += 2 * 2 * width * cin * 2           # halo rows
        b += 2 * 9 * cin * tn * 2              # weight tile (double buffered)
        b += (th + 2) * width * 3 * cin * 2    # kx-shifted slab scratch
        b += 2 * th * width * tn * 4           # f32 accumulator + epilogue temp
        b += 2 * tho * wo * tn * 2             # output strip
        return b

    cands = [d for d in range(h, 0, -1)
             if h % d == 0 and (not pooled or d % 2 == 0)
             and (max_th is None or d <= max_th)]
    for th in cands:
        if est(th) <= budget:
            return th
    return cands[-1]


def _make_halos(x, th):
    """(N, 2*n_strips, W, C): rows (2s, 2s+1) = input rows (s*th-1, s*th+th),
    zero at the image border.  Reads only ~2/th of the activation (no full pad)."""
    n, h, w, c = x.shape
    ns = h // th
    zero = jnp.zeros((n, 1, w, c), x.dtype)
    if ns == 1:
        top_h, bot_h = zero, zero
    else:
        tops = x[:, th - 1::th][:, :ns - 1]            # rows th-1, 2*th-1, ...
        bots = x[:, th::th][:, :ns - 1]                # rows th,   2*th,   ...
        top_h = jnp.concatenate([zero, tops], axis=1)  # strip 0 top halo is zero
        bot_h = jnp.concatenate([bots, zero], axis=1)  # last strip bottom halo is zero
    return jnp.stack([top_h, bot_h], axis=2).reshape(n, 2 * ns, w, c)


# ----------------------------------------------------------------------------
# Wrappers around pallas_call
# ----------------------------------------------------------------------------
def conv3x3_relu(x, wk, bk, pool=None, max_th=None):
    """x: (N,H,W,Cin) bf16 NHWC (Cin >= 128).  wk: (3, 3*Cin, Cout) bf16.
    bk: (1, Cout) f32.  pool in {None,'max','avg'} fuses a 2x2/2 pool."""
    n, h, w, cin = x.shape
    cout = wk.shape[-1]
    tn = min(cout, 256)
    n_j = cout // tn
    pooled = pool is not None
    if pooled:
        assert h % 2 == 0 and w % 2 == 0, "pooled layers need even H, W"

    th = _pick_strip(h, w, cin, tn, pooled, _STRIP_BUDGET, max_th=max_th)
    ns = h // th
    tho, ho, wo = (th // 2, h // 2, w // 2) if pooled else (th, h, w)
    halos = _make_halos(x, th)

    kern = functools.partial(_conv3x3_kernel, th=th, width=w, pool=pool)
    out = pl.pallas_call(
        kern,
        out_shape=jax.ShapeDtypeStruct((n, ho, wo, cout), jnp.bfloat16),
        grid=(n_j, n, ns),                       # Cout tile outermost => weights resident
        in_specs=[
            pl.BlockSpec((1, th, w, cin), lambda j, b, s: (b, s, 0, 0)),
            pl.BlockSpec((1, 2, w, cin), lambda j, b, s: (b, s, 0, 0)),
            pl.BlockSpec((3, 3 * cin, tn), lambda j, b, s: (0, 0, j)),
            pl.BlockSpec((1, tn), lambda j, b, s: (0, j)),
        ],
        out_specs=pl.BlockSpec((1, tho, wo, tn), lambda j, b, s: (b, s, 0, j)),
        scratch_shapes=[
            pltpu.VMEM(((th + 2) * w, 3 * cin), jnp.bfloat16),
            pltpu.VMEM((th * w, tn), jnp.float32),
        ],
        compiler_params=pltpu.CompilerParams(
            dimension_semantics=("arbitrary", "arbitrary", "arbitrary"),
            vmem_limit_bytes=_VMEM_LIMIT,
        ),
    )(x, halos, wk, bk)
    return out


def _matmul_relu_kernel(x_ref, w_ref, b_ref, o_ref):
    y = jnp.dot(x_ref[0], w_ref[...], preferred_element_type=jnp.float32)
    o_ref[0] = jnp.maximum(y + b_ref[...], 0.0).astype(o_ref.dtype)


def conv1_1_im2col(x, wk, bk):
    """First layer (Cin=3): cheap wrapper-side im2col to K=27 (padded to 32)
    and a single dense MXU matmul + bias + ReLU."""
    n, h, w, _ = x.shape
    k, cout = wk.shape
    xp = jnp.pad(x, ((0, 0), (1, 1), (1, 1), (0, 0)))          # tiny (3-channel) pad
    cols = [xp[:, ky:ky + h, kx:kx + w, :] for ky in range(3) for kx in range(3)]
    xc = jnp.concatenate(cols, axis=-1)                        # (N, H, W, 27)
    xc = jnp.pad(xc, ((0, 0), (0, 0), (0, 0), (0, k - xc.shape[-1])))
    m = h * w
    xc = xc.reshape(n, m, k)
    tm = next((d for d in range(min(m, 8192), 0, -1)
               if m % d == 0 and (d % 8 == 0 or d == m)), m)

    out = pl.pallas_call(
        _matmul_relu_kernel,
        out_shape=jax.ShapeDtypeStruct((n, m, cout), jnp.bfloat16),
        grid=(n, m // tm),
        in_specs=[
            pl.BlockSpec((1, tm, k), lambda b, i: (b, i, 0)),
            pl.BlockSpec((k, cout), lambda b, i: (0, 0)),
            pl.BlockSpec((1, cout), lambda b, i: (0, 0)),
        ],
        out_specs=pl.BlockSpec((1, tm, cout), lambda b, i: (b, i, 0)),
        compiler_params=pltpu.CompilerParams(
            dimension_semantics=("arbitrary", "arbitrary"),
            vmem_limit_bytes=_VMEM_LIMIT,
        ),
    )(xc, wk, bk)
    return out.reshape(n, h, w, cout)


# ----------------------------------------------------------------------------
# VGG_ST parameters and forward
# ----------------------------------------------------------------------------
_LAYER_SPECS = [
    ("conv1_1", 3, 64), ("conv1_2", 64, 64),
    ("conv2_1", 64, 128), ("conv2_2", 128, 128),
    ("conv3_1", 128, 256), ("conv3_2", 256, 256), ("conv3_3", 256, 256), ("conv3_4", 256, 256),
    ("conv4_1", 256, 512), ("conv4_2", 512, 512), ("conv4_3", 512, 512), ("conv4_4", 512, 512),
    ("conv5_1", 512, 512), ("conv5_2", 512, 512), ("conv5_3", 512, 512), ("conv5_4", 512, 512),
]

_BLOCKS = [
    ["conv1_1", "conv1_2"],
    ["conv2_1", "conv2_2"],
    ["conv3_1", "conv3_2", "conv3_3", "conv3_4"],
    ["conv4_1", "conv4_2", "conv4_3", "conv4_4"],
    ["conv5_1", "conv5_2", "conv5_3", "conv5_4"],
]

# Zero-pad block-1 channels 64 -> 128 so every conv I/O is lane-dense.
_CIN_PAD = {"conv1_2": 128, "conv2_1": 128}
_COUT_PAD = {"conv1_2": 128}


def init_params(key):
    """He-style init matching the nn.Conv2d shapes (3x3, pad=1), HWIO layout."""
    params = {}
    for i, (name, cin, cout) in enumerate(_LAYER_SPECS):
        kw, kb = jax.random.split(jax.random.fold_in(key, i))
        w = jax.random.normal(kw, (3, 3, cin, cout), jnp.float32) * (2.0 / (9 * cin)) ** 0.5
        b = jax.random.normal(kb, (cout,), jnp.float32) * 0.01
        params[name] = (w, b)
    return params


def prepare_params(params):
    """Kernel layouts: conv1_1 -> (32, 128) im2col weights; others -> (3, 3*Cin, Cout)
    bf16 weights (block-1 channels padded to 128) and (1, Cout) f32 bias."""
    kp = {}
    for name, (w, b) in params.items():
        cin, cout = w.shape[2], w.shape[3]
        if name == "conv1_1":
            wk = jnp.pad(w.reshape(27, cout), ((0, 5), (0, 128 - cout)))
            bk = jnp.pad(b, ((0, 128 - cout),))
            kp[name] = (wk.astype(jnp.bfloat16), bk.reshape(1, 128).astype(jnp.float32))
            continue
        cin_p = _CIN_PAD.get(name, cin)
        cout_p = _COUT_PAD.get(name, cout)
        w = jnp.pad(w, ((0, 0), (0, 0), (0, cin_p - cin), (0, cout_p - cout)))
        b = jnp.pad(b, ((0, cout_p - cout),))
        kp[name] = (w.reshape(3, 3 * cin_p, cout_p).astype(jnp.bfloat16),
                    b.reshape(1, cout_p).astype(jnp.float32))
    return kp


def vgg_st_forward(x_nchw, kparams, pool="max"):
    """Forward pass of VGG_ST; returns [final pool ('p5') tensor] in NCHW float32."""
    x = jnp.transpose(x_nchw, (0, 2, 3, 1)).astype(jnp.bfloat16)     # NCHW -> NHWC bf16
    for block in _BLOCKS:
        for i, name in enumerate(block):
            w, b = kparams[name]
            fuse = pool if i == len(block) - 1 else None              # fuse pool into last conv
            if name == "conv1_1":
                x = conv1_1_im2col(x, w, b)
            else:
                x = conv3x3_relu(x, w, b, pool=fuse)
    return [jnp.transpose(x, (0, 3, 1, 2)).astype(jnp.float32)]       # back to NCHW f32


# ----------------------------------------------------------------------------
# Correctness check of the strip/halo path against XLA's conv
# ----------------------------------------------------------------------------
def _check_single_layer(key):
    kx, kw, kb = jax.random.split(key, 3)
    x = jax.random.normal(kx, (1, 16, 16, 128), jnp.float32).astype(jnp.bfloat16)
    w = (jax.random.normal(kw, (3, 3, 128, 128), jnp.float32) * 0.05).astype(jnp.bfloat16)
    b = jax.random.normal(kb, (128,), jnp.float32) * 0.1

    got = jax.jit(functools.partial(conv3x3_relu, pool="max", max_th=4))(
        x, w.reshape(3, 3 * 128, 128), b.reshape(1, 128))             # 4 strips of 4 rows
    got = jax.block_until_ready(got)

    ref = lax.conv_general_dilated(
        x.astype(jnp.float32), w.astype(jnp.float32), (1, 1), "SAME",
        dimension_numbers=("NHWC", "HWIO", "NHWC"),
        precision=lax.Precision.HIGHEST)
    ref = jnp.maximum(ref + b, 0.0)
    ref = ref.reshape(1, 8, 2, 8, 2, 128).max(axis=(2, 4))

    err = float(jnp.max(jnp.abs(got.astype(jnp.float32) - ref)))
    scale = float(jnp.max(jnp.abs(ref))) + 1e-6
    assert err / scale < 2e-2, (err, scale)


# ----------------------------------------------------------------------------
# Demo / smoke test
# ----------------------------------------------------------------------------
if __name__ == "__main__":
    key = jax.random.PRNGKey(0)

    # Exercise the multi-strip + halo path and validate against XLA's conv.
    _check_single_layer(jax.random.fold_in(key, 3))

    params = init_params(jax.random.fold_in(key, 1))
    kparams = prepare_params(params)

    # Small input consistent with the module: batch=2, RGB, 32x32 spatial
    # (32 = 2^5 so all five 2x2 pools divide evenly; final feature map is 1x1).
    x = jax.random.normal(jax.random.fold_in(key, 2), (2, 3, 32, 32), jnp.float32)

    fwd = jax.jit(functools.partial(vgg_st_forward, pool="max"))
    (p5,) = fwd(x, kparams)
    p5 = jax.block_until_ready(p5)

    assert p5.shape == (2, 512, 1, 1), p5.shape
    assert p5.dtype == jnp.float32
    assert bool(jnp.all(jnp.isfinite(p5)))
    print("KERNEL_OK")
</pallas_src>

<mosaic_0001>
module attributes {stable_mosaic.version = 11 : i64} {
  func.func @_conv3x3_kernel(%arg0: i32, %arg1: i32, %arg2: i32, %arg3: memref<1x4x16x128xbf16, #tpu.memory_space<vmem>>, %arg4: memref<1x2x16x128xbf16, #tpu.memory_space<vmem>>, %arg5: memref<3x384x128xbf16, #tpu.memory_space<vmem>>, %arg6: memref<1x128xf32, #tpu.memory_space<vmem>>, %arg7: memref<1x2x8x128xbf16, #tpu.memory_space<vmem>>, %arg8: memref<96x384xbf16, #tpu.memory_space<vmem>>, %arg9: memref<64x128xf32, #tpu.memory_space<vmem>>) attributes {dimension_semantics = [#tpu.dimension_semantics<arbitrary>, #tpu.dimension_semantics<arbitrary>, #tpu.dimension_semantics<arbitrary>], iteration_bounds = array<i64: 1, 1, 4>, scalar_prefetch = 0 : i64, scratch_operands = 2 : i64, tpu.core_type = #tpu.core_type<tc>, window_params = [{transform_indices = @transform_0, window_bounds = array<i64: 1, 4, 16, 128>}, {transform_indices = @transform_1, window_bounds = array<i64: 1, 2, 16, 128>}, {transform_indices = @transform_2, window_bounds = array<i64: 3, 384, 128>}, {transform_indices = @transform_3, window_bounds = array<i64: 1, 128>}, {transform_indices = @transform_4, window_bounds = array<i64: 1, 2, 8, 128>}]} {
    %c0 = arith.constant 0 : index
    %c0_0 = arith.constant 0 : index
    %c0_1 = arith.constant 0 : index
    %c0_2 = arith.constant 0 : index
    %0 = vector.load %arg3[%c0, %c0_0, %c0_1, %c0_2] : memref<1x4x16x128xbf16, #tpu.memory_space<vmem>>, vector<1x4x16x128xbf16>
    %1 = vector.shape_cast %0 : vector<1x4x16x128xbf16> to vector<4x16x128xbf16>
    %c0_3 = arith.constant 0 : index
    %c0_4 = arith.constant 0 : index
    %c0_5 = arith.constant 0 : index
    %c0_6 = arith.constant 0 : index
    %2 = vector.load %arg4[%c0_3, %c0_4, %c0_5, %c0_6] : memref<1x2x16x128xbf16, #tpu.memory_space<vmem>>, vector<1x2x16x128xbf16>
    %3 = vector.shape_cast %2 : vector<1x2x16x128xbf16> to vector<2x16x128xbf16>
    %4 = vector.extract_strided_slice %3 {offsets = [0, 0, 0], sizes = [1, 16, 128], strides = [1, 1, 1]} : vector<2x16x128xbf16> to vector<1x16x128xbf16>
    %cst = arith.constant 0.000000e+00 : bf16
    %5 = vector.broadcast %cst : bf16 to vector<1x1x128xbf16>
    %6 = vector.extract_strided_slice %4 {offsets = [0, 0, 0], sizes = [1, 15, 128], strides = [1, 1, 1]} : vector<1x16x128xbf16> to vector<1x15x128xbf16>
    %7 = tpu.concatenate %5, %6 in 1 : vector<1x1x128xbf16>, vector<1x15x128xbf16> -> vector<1x16x128xbf16>
    %8 = vector.shape_cast %7 : vector<1x16x128xbf16> to vector<16x128xbf16>
    %c0_7 = arith.constant 0 : index
    %c0_8 = arith.constant 0 : index
    %9 = vector.load %arg8[%c0_7, %c0_8] : memref<96x384xbf16, #tpu.memory_space<vmem>>, vector<16x128xbf16>
    tpu.vector_store %arg8[%c0_7, %c0_8], %8 {strides = array<i32>} : memref<96x384xbf16, #tpu.memory_space<vmem>>, vector<16x128xbf16>,
    %cst_9 = arith.constant 0.000000e+00 : bf16
    %10 = vector.broadcast %cst_9 : bf16 to vector<4x1x128xbf16>
    %11 = vector.extract_strided_slice %1 {offsets = [0, 0, 0], sizes = [4, 15, 128], strides = [1, 1, 1]} : vector<4x16x128xbf16> to vector<4x15x128xbf16>
    %12 = tpu.concatenate %10, %11 in 1 : vector<4x1x128xbf16>, vector<4x15x128xbf16> -> vector<4x16x128xbf16>
    %13 = vector.shape_cast %12 : vector<4x16x128xbf16> to vector<64x128xbf16>
    %c16 = arith.constant 16 : index
    %c0_10 = arith.constant 0 : index
    %14 = vector.load %arg8[%c16, %c0_10] : memref<96x384xbf16, #tpu.memory_space<vmem>>, vector<64x128xbf16>
    tpu.vector_store %arg8[%c16, %c0_10], %13 {strides = array<i32>} : memref<96x384xbf16, #tpu.memory_space<vmem>>, vector<64x128xbf16>,
    %15 = vector.extract_strided_slice %3 {offsets = [1, 0, 0], sizes = [1, 16, 128], strides = [1, 1, 1]} : vector<2x16x128xbf16> to vector<1x16x128xbf16>
    %cst_11 = arith.constant 0.000000e+00 : bf16
    %16 = vector.broadcast %cst_11 : bf16 to vector<1x1x128xbf16>
    %17 = vector.extract_strided_slice %15 {offsets = [0, 0, 0], sizes = [1, 15, 128], strides = [1, 1, 1]} : vector<1x16x128xbf16> to vector<1x15x128xbf16>
    %18 = tpu.concatenate %16, %17 in 1 : vector<1x1x128xbf16>, vector<1x15x128xbf16> -> vector<1x16x128xbf16>
    %19 = vector.shape_cast %18 : vector<1x16x128xbf16> to vector<16x128xbf16>
    %c80 = arith.constant 80 : index
    %c0_12 = arith.constant 0 : index
    %20 = vector.load %arg8[%c80, %c0_12] : memref<96x384xbf16, #tpu.memory_space<vmem>>, vector<16x128xbf16>
    tpu.vector_store %arg8[%c80, %c0_12], %19 {strides = array<i32>} : memref<96x384xbf16, #tpu.memory_space<vmem>>, vector<16x128xbf16>,
    %21 = vector.extract_strided_slice %3 {offsets = [0, 0, 0], sizes = [1, 16, 128], strides = [1, 1, 1]} : vector<2x16x128xbf16> to vector<1x16x128xbf16>
    %22 = vector.shape_cast %21 : vector<1x16x128xbf16> to vector<16x128xbf16>
    %c0_13 = arith.constant 0 : index
    %c128 = arith.constant 128 : index
    %23 = vector.load %arg8[%c0_13, %c128] : memref<96x384xbf16, #tpu.memory_space<vmem>>, vector<16x128xbf16>
    tpu.vector_store %arg8[%c0_13, %c128], %22 {strides = array<i32>} : memref<96x384xbf16, #tpu.memory_space<vmem>>, vector<16x128xbf16>,
    %24 = vector.shape_cast %1 : vector<4x16x128xbf16> to vector<64x128xbf16>
    %c16_14 = arith.constant 16 : index
    %c128_15 = arith.constant 128 : index
    %25 = vector.load %arg8[%c16_14, %c128_15] : memref<96x384xbf16, #tpu.memory_space<vmem>>, vector<64x128xbf16>
    tpu.vector_store %arg8[%c16_14, %c128_15], %24 {strides = array<i32>} : memref<96x384xbf16, #tpu.memory_space<vmem>>, vector<64x128xbf16>,
    %26 = vector.extract_strided_slice %3 {offsets = [1, 0, 0], sizes = [1, 16, 128], strides = [1, 1, 1]} : vector<2x16x128xbf16> to vector<1x16x128xbf16>
    %27 = vector.shape_cast %26 : vector<1x16x128xbf16> to vector<16x128xbf16>
    %c80_16 = arith.constant 80 : index
    %c128_17 = arith.constant 128 : index
    %28 = vector.load %arg8[%c80_16, %c128_17] : memref<96x384xbf16, #tpu.memory_space<vmem>>, vector<16x128xbf16>
    tpu.vector_store %arg8[%c80_16, %c128_17], %27 {strides = array<i32>} : memref<96x384xbf16, #tpu.memory_space<vmem>>, vector<16x128xbf16>,
    %29 = vector.extract_strided_slice %3 {offsets = [0, 0, 0], sizes = [1, 16, 128], strides = [1, 1, 1]} : vector<2x16x128xbf16> to vector<1x16x128xbf16>
    %30 = vector.extract_strided_slice %29 {offsets = [0, 1, 0], sizes = [1, 15, 128], strides = [1, 1, 1]} : vector<1x16x128xbf16> to vector<1x15x128xbf16>
    %cst_18 = arith.constant 0.000000e+00 : bf16
    %31 = vector.broadcast %cst_18 : bf16 to vector<1x1x128xbf16>
    %32 = tpu.concatenate %30, %31 in 1 : vector<1x15x128xbf16>, vector<1x1x128xbf16> -> vector<1x16x128xbf16>
    %33 = vector.shape_cast %32 : vector<1x16x128xbf16> to vector<16x128xbf16>
    %c0_19 = arith.constant 0 : index
    %c256 = arith.constant 256 : index
    %34 = vector.load %arg8[%c0_19, %c256] : memref<96x384xbf16, #tpu.memory_space<vmem>>, vector<16x128xbf16>
    tpu.vector_store %arg8[%c0_19, %c256], %33 {strides = array<i32>} : memref<96x384xbf16, #tpu.memory_space<vmem>>, vector<16x128xbf16>,
    %35 = vector.extract_strided_slice %1 {offsets = [0, 1, 0], sizes = [4, 15, 128], strides = [1, 1, 1]} : vector<4x16x128xbf16> to vector<4x15x128xbf16>
    %cst_20 = arith.constant 0.000000e+00 : bf16
    %36 = vector.broadcast %cst_20 : bf16 to vector<4x1x128xbf16>
    %37 = tpu.concatenate %35, %36 in 1 : vector<4x15x128xbf16>, vector<4x1x128xbf16> -> vector<4x16x128xbf16>
    %38 = vector.shape_cast %37 : vector<4x16x128xbf16> to vector<64x128xbf16>
    %c16_21 = arith.constant 16 : index
    %c256_22 = arith.constant 256 : index
    %39 = vector.load %arg8[%c16_21, %c256_22] : memref<96x384xbf16, #tpu.memory_space<vmem>>, vector<64x128xbf16>
    tpu.vector_store %arg8[%c16_21, %c256_22], %38 {strides = array<i32>} : memref<96x384xbf16, #tpu.memory_space<vmem>>, vector<64x128xbf16>,
    %40 = vector.extract_strided_slice %3 {offsets = [1, 0, 0], sizes = [1, 16, 128], strides = [1, 1, 1]} : vector<2x16x128xbf16> to vector<1x16x128xbf16>
    %41 = vector.extract_strided_slice %40 {offsets = [0, 1, 0], sizes = [1, 15, 128], strides = [1, 1, 1]} : vector<1x16x128xbf16> to vector<1x15x128xbf16>
    %cst_23 = arith.constant 0.000000e+00 : bf16
    %42 = vector.broadcast %cst_23 : bf16 to vector<1x1x128xbf16>
    %43 = tpu.concatenate %41, %42 in 1 : vector<1x15x128xbf16>, vector<1x1x128xbf16> -> vector<1x16x128xbf16>
    %44 = vector.shape_cast %43 : vector<1x16x128xbf16> to vector<16x128xbf16>
    %c80_24 = arith.constant 80 : index
    %c256_25 = arith.constant 256 : index
    %45 = vector.load %arg8[%c80_24, %c256_25] : memref<96x384xbf16, #tpu.memory_space<vmem>>, vector<16x128xbf16>
    tpu.vector_store %arg8[%c80_24, %c256_25], %44 {strides = array<i32>} : memref<96x384xbf16, #tpu.memory_space<vmem>>, vector<16x128xbf16>,
    %c0_26 = arith.constant 0 : index
    %c0_27 = arith.constant 0 : index
    %46 = vector.load %arg8[%c0_26, %c0_27] : memref<96x384xbf16, #tpu.memory_space<vmem>>, vector<64x384xbf16>
    %c0_28 = arith.constant 0 : index
    %c0_29 = arith.constant 0 : index
    %c0_30 = arith.constant 0 : index
    %47 = vector.load %arg5[%c0_28, %c0_29, %c0_30] : memref<3x384x128xbf16, #tpu.memory_space<vmem>>, vector<1x384x128xbf16>
    %48 = vector.shape_cast %47 : vector<1x384x128xbf16> to vector<384x128xbf16>
    %cst_31 = arith.constant dense<0.000000e+00> : vector<64x128xf32>
    %49 = tpu.matmul %46, %48, %cst_31 {dimension_numbers = #tpu.dot_dimension_numbers<[1], [0], [0], [1], [0, 0, 1, 1], [], []>} : vector<64x384xbf16>, vector<384x128xbf16>, vector<64x128xf32> -> vector<64x128xf32>
    %c0_32 = arith.constant 0 : index
    %c0_33 = arith.constant 0 : index
    %50 = vector.load %arg9[%c0_32, %c0_33] : memref<64x128xf32, #tpu.memory_space<vmem>>, vector<64x128xf32>
    tpu.vector_store %arg9[%c0_32, %c0_33], %49 {strides = array<i32>} : memref<64x128xf32, #tpu.memory_space<vmem>>, vector<64x128xf32>,
    %c0_34 = arith.constant 0 : index
    %c0_35 = arith.constant 0 : index
    %51 = vector.load %arg9[%c0_34, %c0_35] : memref<64x128xf32, #tpu.memory_space<vmem>>, vector<64x128xf32>
    %c16_36 = arith.constant 16 : index
    %c0_37 = arith.constant 0 : index
    %52 = vector.load %arg8[%c16_36, %c0_37] : memref<96x384xbf16, #tpu.memory_space<vmem>>, vector<64x384xbf16>
    %c1 = arith.constant 1 : index
    %c0_38 = arith.constant 0 : index
    %c0_39 = arith.constant 0 : index
    %53 = vector.load %arg5[%c1, %c0_38, %c0_39] : memref<3x384x128xbf16, #tpu.memory_space<vmem>>, vector<1x384x128xbf16>
    %54 = vector.shape_cast %53 : vector<1x384x128xbf16> to vector<384x128xbf16>
    %cst_40 = arith.constant dense<0.000000e+00> : vector<64x128xf32>
    %55 = tpu.matmul %52, %54, %cst_40 {dimension_numbers = #tpu.dot_dimension_numbers<[1], [0], [0], [1], [0, 0, 1, 1], [], []>} : vector<64x384xbf16>, vector<384x128xbf16>, vector<64x128xf32> -> vector<64x128xf32>
    %56 = arith.addf %51, %55 : vector<64x128xf32>
    %c0_41 = arith.constant 0 : index
    %c0_42 = arith.constant 0 : index
    %57 = vector.load %arg9[%c0_41, %c0_42] : memref<64x128xf32, #tpu.memory_space<vmem>>, vector<64x128xf32>
    tpu.vector_store %arg9[%c0_41, %c0_42], %56 {strides = array<i32>} : memref<64x128xf32, #tpu.memory_space<vmem>>, vector<64x128xf32>,
    %c0_43 = arith.constant 0 : index
    %c0_44 = arith.constant 0 : index
    %58 = vector.load %arg9[%c0_43, %c0_44] : memref<64x128xf32, #tpu.memory_space<vmem>>, vector<64x128xf32>
    %c32 = arith.constant 32 : index
    %c0_45 = arith.constant 0 : index
    %59 = vector.load %arg8[%c32, %c0_45] : memref<96x384xbf16, #tpu.memory_space<vmem>>, vector<64x384xbf16>
    %c2 = arith.constant 2 : index
    %c0_46 = arith.constant 0 : index
    %c0_47 = arith.constant 0 : index
    %60 = vector.load %arg5[%c2, %c0_46, %c0_47] : memref<3x384x128xbf16, #tpu.memory_space<vmem>>, vector<1x384x128xbf16>
    %61 = vector.shape_cast %60 : vector<1x384x128xbf16> to vector<384x128xbf16>
    %cst_48 = arith.constant dense<0.000000e+00> : vector<64x128xf32>
    %62 = tpu.matmul %59, %61, %cst_48 {dimension_numbers = #tpu.dot_dimension_numbers<[1], [0], [0], [1], [0, 0, 1, 1], [], []>} : vector<64x384xbf16>, vector<384x128xbf16>, vector<64x128xf32> -> vector<64x128xf32>
    %63 = arith.addf %58, %62 : vector<64x128xf32>
    %c0_49 = arith.constant 0 : index
    %c0_50 = arith.constant 0 : index
    %64 = vector.load %arg9[%c0_49, %c0_50] : memref<64x128xf32, #tpu.memory_space<vmem>>, vector<64x128xf32>
    tpu.vector_store %arg9[%c0_49, %c0_50], %63 {strides = array<i32>} : memref<64x128xf32, #tpu.memory_space<vmem>>, vector<64x128xf32>,
    %c0_51 = arith.constant 0 : index
    %c0_52 = arith.constant 0 : index
    %65 = vector.load %arg9[%c0_51, %c0_52] : memref<64x128xf32, #tpu.memory_space<vmem>>, vector<64x128xf32>
    %c0_53 = arith.constant 0 : index
    %c0_54 = arith.constant 0 : index
    %66 = vector.load %arg6[%c0_53, %c0_54] : memref<1x128xf32, #tpu.memory_space<vmem>>, vector<1x128xf32>
    %67 = vector.broadcast %66 : vector<1x128xf32> to vector<64x128xf32>
    %68 = arith.addf %65, %67 : vector<64x128xf32>
    %cst_55 = arith.constant 0.000000e+00 : f32
    %69 = vector.broadcast %cst_55 : f32 to vector<64x128xf32>
    %70 = arith.maximumf %68, %69 : vector<64x128xf32>
    %71 = vector.shape_cast %70 : vector<64x128xf32> to vector<4x8x2x128xf32>
    %cst_56 = arith.constant dense<0xFF800000> : vector<4x8x128xf32>
    %72 = vector.multi_reduction <maximumf>, %71, %cst_56 [2] : vector<4x8x2x128xf32> to vector<4x8x128xf32>
    %73 = vector.shape_cast %72 : vector<4x8x128xf32> to vector<2x2x8x128xf32>
    %cst_57 = arith.constant dense<0xFF800000> : vector<2x8x128xf32>
    %74 = vector.multi_reduction <maximumf>, %73, %cst_57 [1] : vector<2x2x8x128xf32> to vector<2x8x128xf32>
    %75 = arith.truncf %74 : vector<2x8x128xf32> to vector<2x8x128xbf16>
    %c0_58 = arith.constant 0 : index
    %c0_59 = arith.constant 0 : index
    %c0_60 = arith.constant 0 : index
    %c0_61 = arith.constant 0 : index
    %76 = vector.load %arg7[%c0_58, %c0_59, %c0_60, %c0_61] : memref<1x2x8x128xbf16, #tpu.memory_space<vmem>>, vector<1x2x8x128xbf16>
    %77 = vector.shape_cast %76 : vector<1x2x8x128xbf16> to vector<2x8x128xbf16>
    %78 = vector.shape_cast %75 : vector<2x8x128xbf16> to vector<1x2x8x128xbf16>
    tpu.vector_store %arg7[%c0_58, %c0_59, %c0_60, %c0_61], %78 {strides = array<i32>} : memref<1x2x8x128xbf16, #tpu.memory_space<vmem>>, vector<1x2x8x128xbf16>,
    return
  }
  func.func @transform_0(%arg0: i32, %arg1: i32, %arg2: i32) -> (i32, i32, i32, i32) {
    %c0_i32 = arith.constant 0 : i32
    %c0_i32_0 = arith.constant 0 : i32
    %c0_i32_1 = arith.constant 0 : i32
    return %arg1, %arg2, %c0_i32, %c0_i32_0 : i32, i32, i32, i32
  }
  func.func @transform_1(%arg0: i32, %arg1: i32, %arg2: i32) -> (i32, i32, i32, i32) {
    %c0_i32 = arith.constant 0 : i32
    %c0_i32_0 = arith.constant 0 : i32
    %c0_i32_1 = arith.constant 0 : i32
    return %arg1, %arg2, %c0_i32, %c0_i32_0 : i32, i32, i32, i32
  }
  func.func @transform_2(%arg0: i32, %arg1: i32, %arg2: i32) -> (i32, i32, i32) {
    %c0_i32 = arith.constant 0 : i32
    %c0_i32_0 = arith.constant 0 : i32
    %c0_i32_1 = arith.constant 0 : i32
    return %c0_i32, %c0_i32_0, %arg0 : i32, i32, i32
  }
  func.func @transform_3(%arg0: i32, %arg1: i32, %arg2: i32) -> (i32, i32) {
    %c0_i32 = arith.constant 0 : i32
    %c0_i32_0 = arith.constant 0 : i32
    return %c0_i32, %arg0 : i32, i32
  }
  func.func @transform_4(%arg0: i32, %arg1: i32, %arg2: i32) -> (i32, i32, i32, i32) {
    %c0_i32 = arith.constant 0 : i32
    %c0_i32_0 = arith.constant 0 : i32
    return %arg1, %arg2, %c0_i32, %arg0 : i32, i32, i32, i32
  }
}

</mosaic_0001>

<bundles_post_ra>
// kernel: conv3x3_relu.1
= control target key start
LH: loop header
LB: loop body
LE: loop exit
PB: predicated region body
PF: predicated region fallthrough
CT: control target
= control target key end

     0   :  { %9 = vsyncpa [#allocation5], 0  ;;  %s3355_s0 = inlined_call_operand.vmem [shape: bf16[1,16,16,128], index: 0, kind: input, shape index: {}]   ;;  %s3356_s1 = inlined_call_operand.vmem [shape: bf16[1,8,16,128], index: 1, kind: input, shape index: {}]   ;;  %s3357_s2 = inlined_call_operand.hbm [shape: bf16[3,384,128], index: 2, kind: input, shape index: {}]   ;;  %s3358_s3 = inlined_call_operand.vmem [shape: f32[1,128], index: 3, kind: input, shape index: {}]   ;;  %s3359_s4 = inlined_call_operand.hbm [shape: bf16[1,8,8,128], index: 4, kind: output, shape index: {}]  }
   0x1   :  { %10 = vsyncpa [#allocation6], 0 }
   0x2   :  { %12 = vsyncpa [#allocation6 + $0x1], 0  ;;  %s2925_s15 = smov 0   ;;  %s2927_s16 = smov 0  }
   0x3   :  { %s2929_s17 = smov 0   ;;  %s2931_s18 = smov 0  }
   0x4   :  { %s2933_s19 = smov 0   ;;  %s2935_s20 = smov 0  }
   0x5 LB: > { %s2230_s21 = sadd.s32 4294967295, %s2891_s20   ;;  %s2231_s22 = sadd.s32 4294967294, %s2891_s20   ;;  %s2891_s20 = sphi %s2935_s20, %s18_s20   ;;  %s2887_s19 = sphi %s2933_s19, %s3381_s19   ;;  %s2883_s18 = sphi %s2931_s18, %s3380_s18   ;;  %s2879_s17 = sphi %s2929_s17, %s3379_s17   ;;  %s2875_s16 = sphi %s2927_s16, %s3378_s16   ;;  %s2871_s15 = sphi %s2925_s15, %s3377_s15  }
   0x6   : > { %s30_s23 = sadd.s32 1, %s2887_s19  ;;  %s156_s24 = sadd.s32 1, %s2879_s17 }
   0x7   : > { %p31_p0 = scmp.ge.s32.totalorder %s30_s23, 4  ;;  %p166_p1 = scmp.ne.s32.totalorder %s2879_s17, %s2875_s16 }
   0x8   : > { %p167_p2 = scmp.eq.s32.totalorder %s2230_s21, 3  ;;  %p172_p3 = scmp.ne.s32.totalorder %s2875_s16, %s2871_s15 }
   0x9   : > { %s3383_s23 = smov (%p31_p0, %s30_s23), 0  ;;  %p173_p5 = scmp.eq.s32.totalorder %s2231_s22, 3 }
   0xa   : > { %p2965_p4 = por %p167_p2, %p166_p1  ;;  %s150_s26 = ssub.s32 %s2887_s19, %s3383_s23 }
   0xb   : > { %p2232_p6 = scmp.ge.s32.totalorder %s2891_s20, 1  ;;  %p154_p7 = scmp.eq.s32.totalorder %s150_s26, 0 }
   0xc   : > { %s3364_s25 = scalar_select %p2965_p4, 1, 0 }
   0xd   : > { %p2972_p8 = por %p173_p5, %p172_p3  ;;  %p180_p9 = scmp.lt.s32.totalorder %s2891_s20, 5 }
   0xe   : > { %s2978_s28 = scalar_select %p154_p7, %s2879_s17, %s156_s24  }
   0xf   : > { %s3365_s27 = scalar_select %p2972_p8, 1, 0 }
  0x10   : > { %p2980_p10 = pnand %p2232_p6, %p180_p9  ;;  %p2984_p11 = scmp.eq.s32.totalorder %s2230_s21, 0 }
  0x11   : > { %s2893_s5 = smov [#allocation4]   ;;  %s2781_s10 = scalar_lea.hbm %s3357_s2, 9216 }
  0x12   : > { %s3366_s29 = scalar_select %p2980_p10, 1, 0 }
  0x13   : > { %s3367_s30 = scalar_select %p2984_p11, 1, 0 }
  0x14   : > { %p2638_p12 = pneg %p2980_p10  ;;  %s194_s6 = sshll.u32 %s2893_s5, 4  ;;  %s195_s6 = int_to_ptr.vmem [resolvable:$true] %s194_s6 }
  0x15   : > { %p2782_p0 = scmp.ne.s32.totalorder %s3357_s2, %s2781_s10  ;;  %p2788_p5 = scmp.lt.u32.totalorder %s2781_s10, %s3357_s2 }
  0x16   : > { %p2992_p13 = pnand %p2984_p11, %p2638_p12 }
  0x18   : > { %p2783_p1 = pneg %p2992_p13 }
  0x1a   : > { %p2784_p2 = pnand %p2783_p1, %p2782_p0 }
  0x1c   : > { %p2785_p3 = pneg %p2784_p2 }
  0x1e   : > { %p2790_p6 = pnand %p2788_p5, %p2785_p3 }
  0x20   : > { %2793 = shalt.err (!%p2790_p6)
}
  0x21   : > { %s2794_s21 = scalar_lea.vmem %s195_s6, 9216  ;;  %p2802_p8 = scmp.lt.s32.totalorder %s195_s6, %s195_s6 }
  0x22   : > { %p2795_p7 = scmp.ne.s32.totalorder %s195_s6, %s2794_s21  ;;  %p2803_p4 = scmp.lt.s32.totalorder %s2794_s21, %s2794_s21 }
  0x24   : > { %p2797_p9 = pnand %p2795_p7, %p2783_p1  ;;  %p2804_p11 = por %p2803_p4, %p2802_p8 }
  0x26   : > { %p2798_p12 = pneg %p2797_p9 }
  0x28   : > { %p2805_p10 = pnand %p2804_p11, %p2798_p12 }
  0x2a   : > { %2808 = shalt.err (!%p2805_p10)
}
  0x2b   : > { %s2894_s22 = smov 64   ;;  %s2895_s24 = smov 4  }
  0x2c   : > { %2641 = dma.hbm_to_vmem [thread:$0]  (!%p2992_p13), %s3357_s2, 9216, %s195_s6, [#allocation5], %s2894_s22, %s2894_s22, %s2895_s24  }
  0x2d   : > { %p3369_p0 = scmp.ne.s32.totalorder %s3366_s29, 0 }
  0x2e   : > { %p3370_p2 = scmp.ne.s32.totalorder (!%p3369_p0), %s3367_s30, 0 }
  0x2f   : > { %244 = sbr.rel (%p3369_p0) target bundleno = 490 (0x1ea), region = 36 }
  0x36   : > { %2862 = dma.done.wait (%p3370_p2), [#allocation5], 9216  }
  0x37   : > { %2864 = vsyncadd (%p3370_p2), [#allocation5], 4294958080  ;;  %v2703_v0 = vld [vmem:[#allocation4 + $0x40] sm:$0xff]   ;;  %v2706_v3 = vld [vmem:[#allocation4 + $0x48] sm:$0xff]   ;;  %s2242_s29 = sshll.u32 %s2883_s18, 1  ;;  %s2239_s30 = sshll.u32 %s2883_s18, 2 }
  0x38   : > { %v2704_v1 = vld [vmem:[#allocation4 + $0x80] sm:$0xff]   ;;  %2364 = vmatprep.subr.bf16.mxu0 %v2703_v0  ;;  %v2707_v4 = vld [vmem:[#allocation4 + $0x88] sm:$0xff]   ;;  %v2709_v6 = vld [vmem:[#allocation4 + $0x50] sm:$0xff]   ;;  %p302_p4 = scmp.lt.s32.totalorder %s2242_s29, 7  ;;  %vm341_vm0 = vsmask.f32 256 }
  0x39   : > { %v2705_v2 = vld [vmem:[#allocation4] sm:$0xff]   ;;  %2520 = vmatprep.subr.bf16.mxu1 %v2704_v1  ;;  %v2708_v5 = vld [vmem:[#allocation4 + $0x8] sm:$0xff]   ;;  %v2710_v7 = vld [vmem:[#allocation4 + $0x90] sm:$0xff]   ;;  %p291_p8 = scmp.lt.s32.totalorder %s2239_s30, 15  ;;  %vm436_vm1 = vsmask.f32 7424 }
  0x3a   : > { %2365 = vmatpush3.bf16.msra.mxu0 %v2705_v2  ;;  %2521 = vmatpush3.bf16.msra.mxu1 %v2704_v1  ;;  %v2711_v8 = vld [vmem:[#allocation4 + $0x10] sm:$0xff]   ;;  %v2712_v9 = vld [vmem:[#allocation4 + $0x58] sm:$0xff]   ;;  %v2715_v12 = vld [vmem:[#allocation4 + $0x60] sm:$0xff]   ;;  %s3385_s29 = smov (!%p302_p4, %s2242_s29), 7  ;;  %vm340_vm2 = vcmask 1040384   ;;  %vm435_vm4 = vcmask 1047552  }
  0x3b   : > { %2366 = vmatprep.subr.bf16.mxu0 %v2706_v3  ;;  %2522 = vmatprep.subr.bf16.mxu1 %v2707_v4  ;;  %v2713_v10 = vld [vmem:[#allocation4 + $0x98] sm:$0xff]   ;;  %v2716_v13 = vld [vmem:[#allocation4 + $0xa0] sm:$0xff]   ;;  %v2718_v15 = vld [vmem:[#allocation4 + $0x68] sm:$0xff]   ;;  %s3387_s30 = smov (!%p291_p8, %s2239_s30), 15  ;;  %s2346_s6 = sshll.u32 %s3385_s29, 3  ;;  %vm1732_vm6 = vcmask 1041408  }
  0x3c   : > { %v2714_v11 = vld [vmem:[#allocation4 + $0x18] sm:$0xff]   ;;  %v2717_v14 = vld [vmem:[#allocation4 + $0x20] sm:$0xff]   ;;  %v2719_v16 = vld [vmem:[#allocation4 + $0xa8] sm:$0xff]   ;;  %s3023_s9 = scalar_lea.vmem %s3356_s1, %s2346_s6  ;;  %s2345_s10 = sshll.u32 %s3387_s30, 3  ;;  %vm2053_vm7 = vcmask 1041409   ;;  %vm2055_vm8 = vcmask 1042434  }
  0x3d   : > { %v2720_v17 = vld [vmem:[#allocation4 + $0x28] sm:$0xff]   ;;  %v2721_v18 = vld [vmem:[#allocation4 + $0x70] sm:$0xff]   ;;  %vm3026_vm3 = vmand %vm340_vm2, %vm341_vm0  ;;  %s3034_s13 = scalar_lea.vmem %s3355_s0, %s2345_s10  ;;  %vm2057_vm9 = vcmask 1043459   ;;  %vm2059_vm10 = vcmask 1044484   ;;  %vm2061_vm11 = vcmask 1045509   ;;  %vm2063_vm12 = vcmask 1046534  }
  0x3e   : > { %2367 = vmatpush3.bf16.msra.mxu0 %v2708_v5  ;;  %2523 = vmatpush3.bf16.msra.mxu1 %v2707_v4  ;;  %v2722_v19 = vld [vmem:[#allocation4 + $0xb0] sm:$0xff]   ;;  %v2724_v22 = vld [vmem:[#allocation4 + $0x78] sm:$0xff]   ;;  %v2727_v23 = vld [vmem:[%s3023_s9] sm:$0xff]   ;;  %vm2065_vm13 = vcmask 1047559   ;;  %s285_s22 = sand.u32 1, %s2875_s16   ;;  %s2363_s5 = sshll.u32 %s2883_s18, 7 }
  0x3f   : > { %2368 = vmatprep.subr.bf16.mxu0 %v2709_v6  ;;  %2524 = vmatprep.subr.bf16.mxu1 %v2710_v7  ;;  %v2723_v21 = vld [vmem:[#allocation4 + $0x30] sm:$0xff]   ;;  %v2725_v24 = vld [vmem:[#allocation4 + $0xb8] sm:$0xff]   ;;  %v333_v25 = vshrl.u32 %v2727_v23, 16  ;;  %v336_v26 = vshll.u32 %v2727_v23, 16  ;;  %vm3037_vm5 = vmand %vm435_vm4, %vm436_vm1  ;;  %s2238_s24 = sshll.u32 %s285_s22, 3  ;;  %s3302_s7 = scalar_lea.hbm %s3359_s4, %s2363_s5 }
  0x40   : > { %701 = vmatprep.mubr.bf16.mxu0 %v2727_v23  ;;  %v2726_v28 = vld [vmem:[#allocation4 + $0x38] sm:$0xff]   ;;  %v2728_v31 = vld [vmem:[#allocation4 + $0x100] sm:$0xff]   ;;  %v2732_v42 = vld [vmem:[#allocation4 + $0x108] sm:$0xff]   ;;  %s3273_s26 = scalar_lea.vmem [#allocation7], %s2238_s24  ;;  %s3309_s18 = scalar_lea.sflag [#allocation6], %s285_s22 }
  0x41   : > { %v335_v29 = vrot.slane %v333_v25, 7  ;;  %v432_v30 = vrot.slane %v336_v26, 1  ;;  %v3042_v32 = vld [vmem:[%s3034_s13] sm:$0xff]   ;;  %v2733_v45 = vld [vmem:[#allocation4 + $0x148] sm:$0xff]   ;;  %v2735_v49 = vld [vmem:[#allocation4 + $0x110] sm:$0xff]   ;;  %s2097_s29 = sshll.u32 %s3273_s26, 4  ;;  %s3304_s29 = int_to_ptr.vmem [resolvable:$true] %s2097_s29 }
  0x42   : > { %2369 = vmatpush3.bf16.msra.mxu0 %v2711_v8  ;;  %2525 = vmatpush3.bf16.msra.mxu1 %v2710_v7  ;;  %v2729_v35 = vld [vmem:[#allocation4 + $0x140] sm:$0xff]   ;;  %v366_v36 = vshrl.u32 %v3042_v32, 16  ;;  %v369_v37 = vshll.u32 %v3042_v32, 16  ;;  %v2734_v47 = vld [vmem:[#allocation4 + $0xc8] sm:$0xff]   ;;  %v2736_v50 = vld [vmem:[#allocation4 + $0x150] sm:$0xff]   ;;  %s2809_s8 = scalar_lea.vmem %s3304_s29, 128 }
  0x43   : > { %2370 = vmatprep.subr.bf16.mxu0 %v2712_v9  ;;  %2526 = vmatprep.subr.bf16.mxu1 %v2713_v10  ;;  %v338_v33 = vor.u32 %v336_v26, %v335_v29  ;;  %v433_v34 = vor.u32 %v432_v30, %v333_v25  ;;  %v2731_v41 = vld [vmem:[#allocation4 + $0xc0] sm:$0xff]   ;;  %v3057_v51 = vld [vmem:[%s3034_s13 + $0x8] sm:$0xff]   ;;  %v2737_v53 = vld [vmem:[#allocation4 + $0xd0] sm:$0xff]   ;;  %p2810_p10 = scmp.ne.s32.totalorder %s3304_s29, %s2809_s8  ;;  %p3375_p11 = scmp.ne.s32.totalorder %s3364_s25, 0 }
  0x44   : > { %v440_v40 = vrot.slane %v369_v37, 1  ;;  %v368_v43 = vrot.slane %v366_v36, 7  ;;  %v2738_v54 = vld [vmem:[#allocation4 + $0x118] sm:$0xff]   ;;  %v373_v56 = vshrl.u32 %v3057_v51, 16  ;;  %v376_v57 = vshll.u32 %v3057_v51, 16  ;;  %v2742_v60 = vld [vmem:[#allocation4 + $0x120] sm:$0xff]  }
  0x45   : > { %v343_v38 = vsel %vm3026_vm3, 0, %v338_v33  ;;  %v438_v39 = vsel %vm3037_vm5, %v433_v34, 0  ;;  %v2739_v55 = vld [vmem:[#allocation4 + $0x158] sm:$0xff]   ;;  %v2743_v63 = vld [vmem:[#allocation4 + $0x160] sm:$0xff]   ;;  %v3068_v0 = vld [vmem:[%s3034_s13 + $0x10] sm:$0xff]   ;;  %p2811_p13 = pnand %p2810_p10, %p3375_p11 }
  0x46   : > { %2371 = vmatpush3.bf16.msra.mxu0 %v2714_v11  ;;  %2527 = vmatpush3.bf16.msra.mxu1 %v2713_v10  ;;  %v441_v44 = vor.u32 %v440_v40, %v366_v36  ;;  %v371_v48 = vor.u32 %v369_v37, %v368_v43  ;;  %v2740_v58 = vld [vmem:[#allocation4 + $0xd8] sm:$0xff]   ;;  %v375_v59 = vrot.slane %v373_v56, 7  ;;  %v442_v61 = vrot.slane %v376_v57, 1  ;;  %v2744_v2 = vld [vmem:[#allocation4 + $0xe0] sm:$0xff]   ;;  %v2745_v7 = vld [vmem:[#allocation4 + $0x128] sm:$0xff]  }
  0x47   : > { %2372 = vmatprep.subr.bf16.mxu0 %v2715_v12  ;;  %2528 = vmatprep.subr.bf16.mxu1 %v2716_v13  ;;  %v380_v4 = vshrl.u32 %v3068_v0, 16  ;;  %v383_v5 = vshll.u32 %v3068_v0, 16  ;;  %v2746_v10 = vld [vmem:[#allocation4 + $0x168] sm:$0xff]   ;;  %v2755_v23 = vld [vmem:[#allocation4 + $0x1c0] sm:$0xff]   ;;  %v2761_v30 = vld [vmem:[#allocation4 + $0x1d0] sm:$0xff]   ;;  %p2812_p1 = pneg %p2811_p13 }
  0x48   : > { %2536 = vmatprep.mubr.bf16.mxu1 %v438_v39  ;;  %v3052_v46 = vsel %vm3037_vm5, %v441_v44, 0  ;;  %v3061_v52 = vsel %vm3026_vm3, 0, %v371_v48  ;;  %v378_v62 = vor.u32 %v376_v57, %v375_v59  ;;  %v443_v1 = vor.u32 %v442_v61, %v373_v56  ;;  %v2747_v11 = vld [vmem:[#allocation4 + $0xe8] sm:$0xff]   ;;  %v2757_v25 = vld [vmem:[#allocation4 + $0x180] sm:$0xff]   ;;  %v3100_v33 = vld [vmem:[%s3034_s13 + $0x18] sm:$0xff]  }
  0x49   : > { %v382_v8 = vrot.slane %v380_v4, 7  ;;  %v444_v9 = vrot.slane %v383_v5, 1  ;;  %v2758_v26 = vld [vmem:[#allocation4 + $0x1c8] sm:$0xff]   ;;  %v2764_v34 = vld [vmem:[#allocation4 + $0x1d8] sm:$0xff]   ;;  %v390_v36 = vshll.u32 %v3100_v33, 16  ;;  %v387_v39 = vshrl.u32 %v3100_v33, 16 }
  0x4a   : > { %2373 = vmatpush3.bf16.msra.mxu0 %v2717_v14  ;;  %2529 = vmatpush3.bf16.msra.mxu1 %v2716_v13  ;;  %v3072_v3 = vsel %vm3026_vm3, 0, %v378_v62  ;;  %v3078_v6 = vsel %vm3037_vm5, %v443_v1, 0  ;;  %v2749_v14 = vld [vmem:[#allocation4 + $0x130] sm:$0xff]   ;;  %v2760_v29 = vld [vmem:[#allocation4 + $0x188] sm:$0xff]   ;;  %v2766_v37 = vld [vmem:[#allocation4 + $0x198] sm:$0xff]  }
  0x4b   : > { %2374 = vmatprep.subr.bf16.mxu0 %v2718_v15  ;;  %2530 = vmatprep.subr.bf16.mxu1 %v2719_v16  ;;  %v385_v12 = vor.u32 %v383_v5, %v382_v8  ;;  %v445_v13 = vor.u32 %v444_v9, %v380_v4  ;;  %v2750_v15 = vld [vmem:[#allocation4 + $0x170] sm:$0xff]   ;;  %v446_v40 = vrot.slane %v390_v36, 1  ;;  %v2780_v43 = vld [vmem:[%s3023_s9 + $0x8] sm:$0xff]   ;;  %v2769_v44 = vld [vmem:[#allocation4 + $0x1a0] sm:$0xff]   ;;  %s2897_s9 = smov [#allocation7]  }
  0x4c   : > { %v411_v48 = vshrl.u32 %v2780_v43, 16  ;;  %v2774_v56 = vld [vmem:[#allocation4 + $0x1f0] sm:$0xff]   ;;  %v2777_v1 = vld [vmem:[#allocation4 + $0x1f8] sm:$0xff]   ;;  %s2813_s10 = sshll.u32 %s2897_s9, 4  ;;  %s2814_s10 = int_to_ptr.vmem [resolvable:$false] %s2813_s10 }
  0x4d   : > { %v2775_v59 = vld [vmem:[#allocation4 + $0x230] sm:$0xff]   ;;  %v2779_v4 = vld [vmem:[#allocation4 + $0x1b8] sm:$0xff]   ;;  %s2815_s11 = scalar_lea.vmem %s2814_s10, 256  ;;  %p2816_p3 = scmp.lt.s32.totalorder %s3304_s29, %s2814_s10 }
  0x4e   : > { %2375 = vmatpush3.bf16.msra.mxu0 %v2720_v17  ;;  %2531 = vmatpush3.bf16.msra.mxu1 %v2719_v16  ;;  %v3085_v16 = vsel %vm3037_vm5, %v445_v13, 0  ;;  %v3090_v17 = vsel %vm3026_vm3, 0, %v385_v12  ;;  %p2817_p5 = scmp.lt.s32.totalorder %s2815_s11, %s2809_s8 }
  0x4f   : > { %2376 = vmatprep.subr.bf16.mxu0 %v2721_v18  ;;  %2532 = vmatprep.subr.bf16.mxu1 %v2722_v19  ;;  %v2751_v18 = vld [vmem:[#allocation4 + $0xf0] sm:$0xff]  }
  0x50   : > { %p2818_p6 = por %p2817_p5, %p2816_p3 }
  0x52   : > { %2377 = vmatpush3.bf16.msra.mxu0 %v2723_v21  ;;  %2533 = vmatpush3.bf16.msra.mxu1 %v2722_v19  ;;  %v2752_v19 = vld [vmem:[#allocation4 + $0x138] sm:$0xff]   ;;  %p2819_p7 = pnand %p2818_p6, %p2812_p1 }
  0x53   : > { %2378 = vmatprep.subr.bf16.mxu0 %v2724_v22  ;;  %2534 = vmatprep.subr.bf16.mxu1 %v2725_v24  ;;  %v2753_v21 = vld [vmem:[#allocation4 + $0x178] sm:$0xff]  }
  0x54   : > { %v2754_v22 = vld [vmem:[#allocation4 + $0xf8] sm:$0xff]  }
  0x56   : > { %2379 = vmatpush3.bf16.msra.mxu0 %v2726_v28  ;;  %2535 = vmatpush3.bf16.msra.mxu1 %v2725_v24  ;;  %v2756_v24 = vld [vmem:[#allocation4 + $0x200] sm:$0xff]   ;;  %v2759_v28 = vld [vmem:[#allocation4 + $0x208] sm:$0xff]  }
  0x57   : > { %2416 = vmatprep.subr.bf16.mxu0 %v2728_v31  ;;  %2544 = vmatprep.subr.bf16.mxu1 %v2729_v35  ;;  %v2762_v31 = vld [vmem:[#allocation4 + $0x210] sm:$0xff]  }
  0x59   : > { %702 = vmatmul.mubr.bf16.vlgmr.msra.gmra.mrb[0].mxu0 %v343_v38  ;;  %2537 = vmatmul.mubr.bf16.vlgmr.msra.gmra.mrb[0].mxu1 %v3052_v46  ;;  %v2767_v38 = vld [vmem:[#allocation4 + $0x1e0] sm:$0xff]  }
  0x5a   : > { %2417 = vmatpush3.bf16.msra.mxu0 %v2731_v41  ;;  %709 = vmatprep.mubr.bf16.mxu0 %v3042_v32  ;;  %v447_v41 = vor.u32 %v446_v40, %v387_v39 }
  0x5b   : > { %2418 = vmatprep.subr.bf16.mxu0 %v2732_v42  ;;  %2545 = vmatpush3.bf16.msra.mxu1 %v2729_v35  ;;  %v2765_v35 = vld [vmem:[#allocation4 + $0x218] sm:$0xff]   ;;  %v2768_v42 = vld [vmem:[#allocation4 + $0x220] sm:$0xff]  }
  0x5c   : > { %2546 = vmatprep.subr.bf16.mxu1 %v2733_v45  ;;  %2540 = vmatprep.mubr.bf16.mxu1 %v3078_v6 }
  0x5e   : > { %2419 = vmatpush3.bf16.msra.mxu0 %v2734_v47  ;;  %v2770_v47 = vld [vmem:[#allocation4 + $0x1e8] sm:$0xff]  }
  0x5f   : > { %2420 = vmatprep.subr.bf16.mxu0 %v2735_v49  ;;  %2547 = vmatpush3.bf16.msra.mxu1 %v2733_v45  ;;  %v389_v45 = vrot.slane %v387_v39, 7  ;;  %v414_v49 = vshll.u32 %v2780_v43, 16 }
  0x60   : > { %2548 = vmatprep.subr.bf16.mxu1 %v2736_v50 }
  0x61   : > { %710 = vmatmul.mubr.bf16.gmra.mrb[4].mxu0 %v3061_v52  ;;  %2541 = vmatmul.mubr.bf16.gmra.mrb[4].mxu1 %v3085_v16 }
  0x62   : > { %2421 = vmatpush3.bf16.msra.mxu0 %v2737_v53  ;;  %717 = vmatprep.mubr.bf16.mxu0 %v3057_v51  ;;  %v413_v53 = vrot.slane %v411_v48, 7 }
  0x63   : > { %2422 = vmatprep.subr.bf16.mxu0 %v2738_v54  ;;  %2549 = vmatpush3.bf16.msra.mxu1 %v2736_v50  ;;  %v2771_v50 = vld [vmem:[#allocation4 + $0x228] sm:$0xff]  }
  0x64   : > { %2550 = vmatprep.subr.bf16.mxu1 %v2739_v55  ;;  %2560 = vmatprep.mubr.bf16.mxu1 %v3052_v46  ;;  %v455_v46 = vsel %vm3037_vm5, %v447_v41, 0  ;;  %v2772_v54 = vld [vmem:[#allocation4 + $0x1a8] sm:$0xff]  }
  0x66   : > { %2423 = vmatpush3.bf16.msra.mxu0 %v2740_v58  ;;  %v416_v58 = vor.u32 %v414_v49, %v413_v53 }
  0x67   : > { %2424 = vmatprep.subr.bf16.mxu0 %v2742_v60  ;;  %2551 = vmatpush3.bf16.msra.mxu1 %v2739_v55  ;;  %v392_v55 = vor.u32 %v390_v36, %v389_v45 }
  0x68   : > { %2552 = vmatprep.subr.bf16.mxu1 %v2743_v63  ;;  %v418_v61 = vsel %vm3026_vm3, 0, %v416_v58 }
  0x69   : > { %718 = vmatmul.mubr.bf16.gmra.mrb[8].mxu0 %v3072_v3  ;;  %v400_v62 = vsel %vm3026_vm3, 0, %v392_v55 }
  0x6a   : > { %2425 = vmatpush3.bf16.msra.mxu0 %v2744_v2  ;;  %725 = vmatprep.mubr.bf16.mxu0 %v3068_v0  ;;  %v2778_v2 = vld [vmem:[#allocation4 + $0x238] sm:$0xff]  }
  0x6b   : > { %2426 = vmatprep.subr.bf16.mxu0 %v2745_v7  ;;  %2553 = vmatpush3.bf16.msra.mxu1 %v2743_v63  ;;  %v2776_v63 = vld [vmem:[#allocation4 + $0x1b0] sm:$0xff]  }
  0x6c   : > { %2554 = vmatprep.subr.bf16.mxu1 %v2746_v10 }
  0x6e   : > { %2427 = vmatpush3.bf16.msra.mxu0 %v2747_v11 }
  0x6f   : > { %2428 = vmatprep.subr.bf16.mxu0 %v2749_v14  ;;  %2555 = vmatpush3.bf16.msra.mxu1 %v2746_v10 }
  0x70   : > { %2556 = vmatprep.subr.bf16.mxu1 %v2750_v15 }
  0x71   : > { %726 = vmatmul.mubr.bf16.gmra.mrb[12].mxu0 %v3090_v17 }
  0x72   : > { %2429 = vmatpush3.bf16.msra.mxu0 %v2751_v18  ;;  %1052 = vmatprep.mubr.bf16.mxu0 %v3042_v32  ;;  %v2763_v32 = vld [vmem:[#allocation4 + $0x190] sm:$0xff]  }
  0x73   : > { %2430 = vmatprep.subr.bf16.mxu0 %v2752_v19  ;;  %2557 = vmatpush3.bf16.msra.mxu1 %v2750_v15 }
  0x74   : > { %2558 = vmatprep.subr.bf16.mxu1 %v2753_v21 }
  0x76   : > { %2431 = vmatpush3.bf16.msra.mxu0 %v2754_v22 }
  0x77   : > { %2468 = vmatprep.subr.bf16.mxu0 %v2755_v23  ;;  %2559 = vmatpush3.bf16.msra.mxu1 %v2753_v21 }
  0x78   : > { %2568 = vmatprep.subr.bf16.mxu1 %v2756_v24 }
  0x79   : > { %1053 = vmatmul.mubr.bf16.vlgmr.msra.gmra.mrb[16].mxu0 %v3061_v52  ;;  %v460_v52 = vrot.slane %v414_v49, 1 }
  0x7a   : > { %2469 = vmatpush3.bf16.msra.mxu0 %v2757_v25  ;;  %1060 = vmatprep.mubr.bf16.mxu0 %v3057_v51 }
  0x7b   : > { %2561 = vmatmul.mubr.bf16.vlgmr.msra.gmra.mrb[0].mxu1 %v3078_v6  ;;  %2470 = vmatprep.subr.bf16.mxu0 %v2758_v26  ;;  %v461_v57 = vor.u32 %v460_v52, %v411_v48 }
  0x7c   : > { %2569 = vmatpush3.bf16.msra.mxu1 %v2756_v24  ;;  %2564 = vmatprep.mubr.bf16.mxu1 %v3085_v16 }
  0x7d   : > { %2570 = vmatprep.subr.bf16.mxu1 %v2759_v28  ;;  %v463_v60 = vsel %vm3037_vm5, %v461_v57, 0 }
  0x7e   : > { %2471 = vmatpush3.bf16.msra.mxu0 %v2760_v29 }
  0x7f   : > { %2472 = vmatprep.subr.bf16.mxu0 %v2761_v30 }
  0x80   : > { %2571 = vmatpush3.bf16.msra.mxu1 %v2759_v28 }
  0x81   : > { %1061 = vmatmul.mubr.bf16.gmra.mrb[20].mxu0 %v3072_v3  ;;  %2572 = vmatprep.subr.bf16.mxu1 %v2762_v31 }
  0x82   : > { %2473 = vmatpush3.bf16.msra.mxu0 %v2763_v32  ;;  %1068 = vmatprep.mubr.bf16.mxu0 %v3068_v0 }
  0x83   : > { %2474 = vmatprep.subr.bf16.mxu0 %v2764_v34  ;;  %2565 = vmatmul.mubr.bf16.gmra.mrb[4].mxu1 %v455_v46 }
  0x84   : > { %2573 = vmatpush3.bf16.msra.mxu1 %v2762_v31  ;;  %2584 = vmatprep.mubr.bf16.mxu1 %v3078_v6 }
  0x85   : > { %2574 = vmatprep.subr.bf16.mxu1 %v2765_v35 }
  0x86   : > { %2475 = vmatpush3.bf16.msra.mxu0 %v2766_v37 }
  0x87   : > { %2476 = vmatprep.subr.bf16.mxu0 %v2767_v38 }
  0x88   : > { %2575 = vmatpush3.bf16.msra.mxu1 %v2765_v35 }
  0x89   : > { %1069 = vmatmul.mubr.bf16.gmra.mrb[24].mxu0 %v3090_v17  ;;  %2576 = vmatprep.subr.bf16.mxu1 %v2768_v42 }
  0x8a   : > { %2477 = vmatpush3.bf16.msra.mxu0 %v2769_v44  ;;  %1076 = vmatprep.mubr.bf16.mxu0 %v3100_v33 }
  0x8b   : > { %2478 = vmatprep.subr.bf16.mxu0 %v2770_v47 }
  0x8c   : > { %2577 = vmatpush3.bf16.msra.mxu1 %v2768_v42 }
  0x8d   : > { %2578 = vmatprep.subr.bf16.mxu1 %v2771_v50 }
  0x8e   : > { %2479 = vmatpush3.bf16.msra.mxu0 %v2772_v54 }
  0x8f   : > { %2480 = vmatprep.subr.bf16.mxu0 %v2774_v56 }
  0x90   : > { %2579 = vmatpush3.bf16.msra.mxu1 %v2771_v50 }
  0x91   : > { %1077 = vmatmul.mubr.bf16.gmra.mrb[28].mxu0 %v400_v62  ;;  %2580 = vmatprep.subr.bf16.mxu1 %v2775_v59 }
  0x92   : > { %2481 = vmatpush3.bf16.msra.mxu0 %v2776_v63  ;;  %1411 = vmatprep.mubr.bf16.mxu0 %v3057_v51 }
  0x93   : > { %2482 = vmatprep.subr.bf16.mxu0 %v2777_v1 }
  0x94   : > { %2581 = vmatpush3.bf16.msra.mxu1 %v2775_v59 }
  0x95   : > { %2582 = vmatprep.subr.bf16.mxu1 %v2778_v2 }
  0x96   : > { %2483 = vmatpush3.bf16.msra.mxu0 %v2779_v4 }
  0x98   : > { %2583 = vmatpush3.bf16.msra.mxu1 %v2778_v2 }
  0x99   : > { %1412 = vmatmul.mubr.bf16.vlgmr.msra.gmra.mrb[32].mxu0 %v3072_v3 }
  0x9a   : > { %1419 = vmatprep.mubr.bf16.mxu0 %v3068_v0 }
  0x9b   : > { %2585 = vmatmul.mubr.bf16.vlgmr.msra.gmra.mrb[0].mxu1 %v3085_v16 }
  0x9c   : > { %2588 = vmatprep.mubr.bf16.mxu1 %v455_v46 }
  0xa1   : > { %1420 = vmatmul.mubr.bf16.gmra.mrb[36].mxu0 %v3090_v17 }
  0xa2   : > { %1427 = vmatprep.mubr.bf16.mxu0 %v3100_v33 }
  0xa3   : > { %2589 = vmatmul.mubr.bf16.gmra.mrb[4].mxu1 %v463_v60  ;;  %v2896_v60 = vmov 1983009808  }
  0xa9   : > { %1428 = vmatmul.mubr.bf16.gmra.mrb[40].mxu0 %v400_v62  ;;  %v1568_v62 = vlaneseq }
  0xaa   : > { %1435 = vmatprep.mubr.bf16.mxu0 %v2780_v43 }
  0xb1   : > { %1436 = vmatmul.mubr.bf16.gmra.mrb[44].mxu0 %v418_v61  ;;  %v1566_v61 = vunpack.c.l.s4 %v2896_v60 }
 0x12c   : > { %v2380_v20 = vpop.f32.mrb[0].mxu0 }
 0x12d   : > { %v2381_v27 = vpop.f32.mrb[1].mxu0 }
 0x12e   : > { %v2382_v51 = vadd.f32 %v2381_v27, %v2380_v20  ;;  %v2383_v5 = vpop.f32.mrb[2].mxu0 }
 0x12f   : > { %v2384_v6 = vpop.f32.mrb[3].mxu0 }
 0x130   : > { %v2385_v7 = vadd.f32 %v2384_v6, %v2383_v5  ;;  %v1567_v5 = vunpack.c.0.s8 %v1566_v61  ;;  %v1569_v6 = vshrl.u32 %v1568_v62, 7 }
 0x134   : > { %v2386_v3 = vpop.f32.mrb[4].mxu0 }
 0x135   : > { %v2387_v8 = vpop.f32.mrb[5].mxu0 }
 0x136   : > { %v2388_v0 = vadd.f32 %v2387_v8, %v2386_v3  ;;  %v2389_v9 = vpop.f32.mrb[6].mxu0  ;;  %v3139_v8 = vld [vmem:[%s3358_s3] ss:$0 sm:$0xff] }
 0x137   : > { %v2390_v10 = vpop.f32.mrb[7].mxu0 }
 0x138   : > { %v2391_v11 = vadd.f32 %v2390_v10, %v2389_v9 }
 0x13c   : > { %v2392_v12 = vpop.f32.mrb[8].mxu0 }
 0x13d   : > { %v2393_v13 = vpop.f32.mrb[9].mxu0 }
 0x13e   : > { %v2394_v14 = vadd.f32 %v2393_v13, %v2392_v12  ;;  %v2395_v15 = vpop.f32.mrb[10].mxu0  ;;  %v3142_v12 = vsub.s32 %v1567_v5, %v1569_v6 }
 0x13f   : > { %v2396_v16 = vpop.f32.mrb[11].mxu0 }
 0x140   : > { %v2397_v17 = vadd.f32 %v2396_v16, %v2395_v15 }
 0x144   : > { %v2398_v18 = vpop.f32.mrb[12].mxu0 }
 0x145   : > { %v2399_v19 = vpop.f32.mrb[13].mxu0 }
 0x146   : > { %v2400_v21 = vadd.f32 %v2399_v19, %v2398_v18  ;;  %v2401_v22 = vpop.f32.mrb[14].mxu0 }
 0x147   : > { %v2402_v23 = vpop.f32.mrb[15].mxu0 }
 0x148   : > { %v2403_v24 = vadd.f32 %v2402_v23, %v2401_v22 }
 0x14c   : > { %v2432_v25 = vpop.f32.mrb[16].mxu0 }
 0x14d   : > { %v2433_v26 = vpop.f32.mrb[17].mxu0 }
 0x14e   : > { %v2434_v28 = vadd.f32 %v2433_v26, %v2432_v25  ;;  %v2435_v29 = vpop.f32.mrb[18].mxu0 }
 0x14f   : > { %v2436_v30 = vpop.f32.mrb[19].mxu0 }
 0x150   : > { %v2595_v31 = vadd.f32 %v2434_v28, %v2382_v51  ;;  %v2437_v32 = vadd.f32 %v2436_v30, %v2435_v29 }
 0x152   : > { %v2601_v33 = vadd.f32 %v2437_v32, %v2385_v7 }
 0x154   : > { %v2438_v34 = vpop.f32.mrb[20].mxu0 }
 0x155   : > { %v2439_v35 = vpop.f32.mrb[21].mxu0 }
 0x156   : > { %v2440_v36 = vadd.f32 %v2439_v35, %v2438_v34  ;;  %v2441_v37 = vpop.f32.mrb[22].mxu0 }
 0x157   : > { %v2442_v38 = vpop.f32.mrb[23].mxu0 }
 0x158   : > { %v2592_v39 = vadd.f32 %v2440_v36, %v2388_v0  ;;  %v2443_v40 = vadd.f32 %v2442_v38, %v2441_v37 }
 0x15a   : > { %v3124_v41 = vadd.f32 %v2443_v40, %v2391_v11 }
 0x15c   : > { %v2444_v42 = vpop.f32.mrb[24].mxu0 }
 0x15d   : > { %v2445_v43 = vpop.f32.mrb[25].mxu0 }
 0x15e   : > { %v2446_v44 = vadd.f32 %v2445_v43, %v2444_v42  ;;  %v2447_v45 = vpop.f32.mrb[26].mxu0 }
 0x15f   : > { %v2448_v46 = vpop.f32.mrb[27].mxu0 }
 0x160   : > { %v3126_v47 = vadd.f32 %v2446_v44, %v2394_v14  ;;  %v2449_v48 = vadd.f32 %v2448_v46, %v2447_v45 }
 0x162   : > { %v3128_v49 = vadd.f32 %v2449_v48, %v2397_v17 }
 0x164   : > { %v2450_v50 = vpop.f32.mrb[28].mxu0 }
 0x165   : > { %v2451_v52 = vpop.f32.mrb[29].mxu0 }
 0x166   : > { %v2452_v53 = vadd.f32 %v2451_v52, %v2450_v50  ;;  %v2453_v54 = vpop.f32.mrb[30].mxu0 }
 0x167   : > { %v2454_v55 = vpop.f32.mrb[31].mxu0 }
 0x168   : > { %v3130_v56 = vadd.f32 %v2452_v53, %v2400_v21  ;;  %v2455_v57 = vadd.f32 %v2454_v55, %v2453_v54 }
 0x16a   : > { %v3132_v58 = vadd.f32 %v2455_v57, %v2403_v24 }
 0x16c   : > { %v2484_v59 = vpop.f32.mrb[32].mxu0 }
 0x16d   : > { %v2485_v63 = vpop.f32.mrb[33].mxu0 }
 0x16e   : > { %v2586_v1 = vpop.f32.mrb[0].mxu1  ;;  %v2486_v2 = vadd.f32 %v2485_v63, %v2484_v59  ;;  %v2487_v4 = vpop.f32.mrb[34].mxu0 }
 0x16f   : > { %v1478_v20 = vpop.f32.mrb[1].mxu1  ;;  %v2488_v27 = vpop.f32.mrb[35].mxu0 }
 0x170   : > { %v2596_v51 = vadd.f32 %v2595_v31, %v2486_v2  ;;  %v3134_v7 = vpop.f32.mrb[2].mxu1  ;;  %v2489_v3 = vadd.f32 %v2488_v27, %v2487_v4 }
 0x171   : > { %v1481_v0 = vpop.f32.mrb[3].mxu1 }
 0x172   : > { %v2597_v9 = vadd.f32 %v2596_v51, %v1478_v20  ;;  %v2602_v10 = vadd.f32 %v2601_v33, %v2489_v3 }
 0x174   : > { %v1540_v11 = vadd.f32 %v2597_v9, %v3139_v8  ;;  %v2603_v13 = vadd.f32 %v2602_v10, %v1481_v0  ;;  %v2490_v14 = vpop.f32.mrb[36].mxu0 }
 0x175   : > { %v2491_v15 = vpop.f32.mrb[37].mxu0 }
 0x176   : > { %v1548_v16 = vmax.f32 %v1540_v11, 0.0  ;;  %v1541_v17 = vadd.f32 %v2603_v13, %v3139_v8  ;;  %v3145_v18 = vpop.f32.mrb[4].mxu1  ;;  %v2492_v19 = vadd.f32 %v2491_v15, %v2490_v14  ;;  %v2493_v21 = vpop.f32.mrb[38].mxu0 }
 0x177   : > { %v3147_v22 = vpop.f32.mrb[5].mxu1  ;;  %v2494_v23 = vpop.f32.mrb[39].mxu0 }
 0x178   : > { %v1564_v24 = vcombine.high %v1548_v16, %v1548_v16  ;;  %v1571_v25 = vrot.slane %v1548_v16, %v3142_v12  ;;  %v1549_v26 = vmax.f32 %v1541_v17, 0.0  ;;  %v2593_v28 = vadd.f32 %v2592_v39, %v2492_v19  ;;  %v3150_v29 = vpop.f32.mrb[6].mxu1 }
 0x179   : > { %v2495_v30 = vadd.f32 %v2494_v23, %v2493_v21  ;;  %v3152_v31 = vpop.f32.mrb[7].mxu1 }
 0x17a   : > { %v1578_v32 = vrot.slane %v1564_v24, %v3142_v12  ;;  %v1579_v33 = vcombine.high %v1571_v25, %v1571_v25  ;;  %v1733_v34 = vsel %vm1732_vm6, %v1571_v25, -inf  ;;  %v1581_v35 = vcombine.high %v1549_v26, %v1549_v26 }
 0x17b   : > { %v1734_v36 = vrot.slane %v1733_v34, 4  ;;  %v1588_v37 = vrot.slane %v1549_v26, %v3142_v12  ;;  %v2594_v38 = vadd.f32 %v2593_v28, %v2586_v1  ;;  %v3158_v40 = vadd.f32 %v3124_v41, %v2495_v30 }
 0x17c   : > { %v1580_v42 = vcombine.high %v1578_v32, %v1578_v32  ;;  %v1740_v39 = vsel %vm1732_vm6, %v1579_v33, -inf  ;;  %v1747_v43 = vsel %vm1732_vm6, %v1578_v32, -inf  ;;  %v1595_v44 = vrot.slane %v1581_v35, %v3142_v12  ;;  %v2496_v45 = vpop.f32.mrb[40].mxu0 }
 0x17d   : > { %v1735_v46 = vmax.f32 %v1733_v34, %v1734_v36  ;;  %v1741_v48 = vrot.slane %v1740_v39, 4  ;;  %v1748_v50 = vrot.slane %v1747_v43, 4  ;;  %v1596_v52 = vcombine.high %v1588_v37, %v1588_v37  ;;  %v2497_v53 = vpop.f32.mrb[41].mxu0 }
 0x17e   : > { %v1754_v54 = vsel %vm1732_vm6, %v1580_v42, -inf  ;;  %v1597_v55 = vcombine.high %v1595_v44, %v1595_v44  ;;  %v1761_v57 = vsel %vm1732_vm6, %v1588_v37, -inf  ;;  %v1775_v41 = vsel %vm1732_vm6, %v1595_v44, -inf  ;;  %v2499_v59 = vpop.f32.mrb[42].mxu0 }
 0x17f   : > { %v1736_v60 = vrot.slane %v1735_v46, 2  ;;  %v1742_v61 = vmax.f32 %v1740_v39, %v1741_v48  ;;  %v1749_v62 = vmax.f32 %v1747_v43, %v1748_v50  ;;  %v1755_v63 = vrot.slane %v1754_v54, 4  ;;  %v2500_v1 = vpop.f32.mrb[43].mxu0 }
 0x180   : > { %v1762_v2 = vrot.slane %v1761_v57, 4  ;;  %v1768_v4 = vsel %vm1732_vm6, %v1596_v52, -inf  ;;  %v1776_v20 = vrot.slane %v1775_v41, 4  ;;  %v1782_v27 = vsel %vm1732_vm6, %v1597_v55, -inf }
 0x181   : > { %v1737_v51 = vmax.f32 %v1735_v46, %v1736_v60  ;;  %v1743_v5 = vrot.slane %v1742_v61, 2  ;;  %v1750_v6 = vrot.slane %v1749_v62, 2  ;;  %v1756_v3 = vmax.f32 %v1754_v54, %v1755_v63 }
 0x182   : > { %v1763_v0 = vmax.f32 %v1761_v57, %v1762_v2  ;;  %v1769_v9 = vrot.slane %v1768_v4, 4  ;;  %v1777_v10 = vmax.f32 %v1775_v41, %v1776_v20  ;;  %v1783_v11 = vrot.slane %v1782_v27, 4 }
 0x183   : > { %v1738_v13 = vrot.slane %v1737_v51, 1  ;;  %v1744_v14 = vmax.f32 %v1742_v61, %v1743_v5  ;;  %v1751_v15 = vmax.f32 %v1749_v62, %v1750_v6  ;;  %v1757_v16 = vrot.slane %v1756_v3, 2 }
 0x184   : > { %v1764_v17 = vrot.slane %v1763_v0, 2  ;;  %v1770_v19 = vmax.f32 %v1768_v4, %v1769_v9  ;;  %v1778_v21 = vrot.slane %v1777_v10, 2  ;;  %v1784_v23 = vmax.f32 %v1782_v27, %v1783_v11  ;;  %v2502_v24 = vpop.f32.mrb[44].mxu0 }
 0x185   : > { %v3168_v25 = vmax.f32 %v1737_v51, %v1738_v13  ;;  %v1745_v26 = vrot.slane %v1744_v14, 1  ;;  %v1752_v28 = vrot.slane %v1751_v15, 1  ;;  %v1758_v30 = vmax.f32 %v1756_v3, %v1757_v16  ;;  %v2503_v32 = vpop.f32.mrb[45].mxu0 }
 0x186   : > { %v1765_v33 = vmax.f32 %v1763_v0, %v1764_v17  ;;  %v1771_v34 = vrot.slane %v1770_v19, 2  ;;  %v1779_v35 = vmax.f32 %v1777_v10, %v1778_v21  ;;  %v1785_v36 = vrot.slane %v1784_v23, 2  ;;  %v3170_v37 = vpop.f32.mrb[46].mxu0 }
 0x187   : > { %v3172_v42 = vmax.f32 %v1744_v14, %v1745_v26  ;;  %v3174_v39 = vmax.f32 %v1751_v15, %v1752_v28  ;;  %v1759_v43 = vrot.slane %v1758_v30, 1  ;;  %v1542_v44 = vadd.f32 %v2594_v38, %v3139_v8  ;;  %v3177_v46 = vpop.f32.mrb[47].mxu0 }
 0x188   : > { %v1766_v48 = vrot.slane %v1765_v33, 1  ;;  %v1772_v50 = vmax.f32 %v1770_v19, %v1771_v34  ;;  %v1780_v52 = vrot.slane %v1779_v35, 1  ;;  %v1786_v54 = vmax.f32 %v1784_v23, %v1785_v36 }
 0x189   : > { %v3179_v55 = vmax.f32 %v1758_v30, %v1759_v43  ;;  %v1550_v57 = vmax.f32 %v1542_v44, 0.0  ;;  %v2600_v41 = vadd.f32 %v3158_v40, %v3134_v7  ;;  %v2498_v60 = vadd.f32 %v2497_v53, %v2496_v45 }
 0x18a   : > { %v3183_v61 = vmax.f32 %v1765_v33, %v1766_v48  ;;  %v1773_v62 = vrot.slane %v1772_v50, 1  ;;  %v3185_v63 = vmax.f32 %v1779_v35, %v1780_v52  ;;  %v1787_v2 = vrot.slane %v1786_v54, 1 }
 0x18b   : > { %v1598_v38 = vcombine.high %v1550_v57, %v1550_v57  ;;  %v1605_v4 = vrot.slane %v1550_v57, %v3142_v12  ;;  %v1543_v20 = vadd.f32 %v2600_v41, %v3139_v8  ;;  %v2608_v27 = vadd.f32 %v3126_v47, %v2498_v60 }
 0x18c   : > { %v3190_v51 = vmax.f32 %v1772_v50, %v1773_v62  ;;  %v3192_v5 = vmax.f32 %v1786_v54, %v1787_v2  ;;  %v2501_v6 = vadd.f32 %v2500_v1, %v2499_v59  ;;  %v2504_v7 = vadd.f32 %v2503_v32, %v2502_v24 }
 0x18d   : > { %v1612_v40 = vrot.slane %v1598_v38, %v3142_v12  ;;  %v1613_v45 = vcombine.high %v1605_v4, %v1605_v4  ;;  %v1789_v53 = vsel %vm1732_vm6, %v1605_v4, -inf  ;;  %v1551_v3 = vmax.f32 %v1543_v20, 0.0 }
 0x18e   : > { %v1790_v0 = vrot.slane %v1789_v53, 4  ;;  %v2609_v9 = vadd.f32 %v2608_v27, %v3147_v22  ;;  %v2614_v10 = vadd.f32 %v3128_v49, %v2501_v6  ;;  %v3199_v11 = vadd.f32 %v3130_v56, %v2504_v7 }
 0x18f   : > { %v1614_v47 = vcombine.high %v1612_v40, %v1612_v40  ;;  %v1796_v13 = vsel %vm1732_vm6, %v1613_v45, -inf  ;;  %v1803_v59 = vsel %vm1732_vm6, %v1612_v40, -inf  ;;  %v1615_v1 = vcombine.high %v1551_v3, %v1551_v3 }
 0x190   : > { %v1791_v14 = vmax.f32 %v1789_v53, %v1790_v0  ;;  %v1797_v15 = vrot.slane %v1796_v13, 4  ;;  %v1804_v16 = vrot.slane %v1803_v59, 4  ;;  %v1622_v17 = vrot.slane %v1551_v3, %v3142_v12 }
 0x191   : > { %v1810_v19 = vsel %vm1732_vm6, %v1614_v47, -inf  ;;  %v1629_v22 = vrot.slane %v1615_v1, %v3142_v12  ;;  %v3207_v49 = vadd.f32 %v2609_v9, %v3139_v8  ;;  %v3210_v56 = vadd.f32 %v2614_v10, %v3152_v31 }
 0x192   : > { %v1792_v21 = vrot.slane %v1791_v14, 2  ;;  %v1798_v23 = vmax.f32 %v1796_v13, %v1797_v15  ;;  %v1805_v24 = vmax.f32 %v1803_v59, %v1804_v16  ;;  %v1811_v26 = vrot.slane %v1810_v19, 4 }
 0x193   : > { %v1630_v28 = vcombine.high %v1622_v17, %v1622_v17  ;;  %v1631_v30 = vcombine.high %v1629_v22, %v1629_v22  ;;  %v1817_v32 = vsel %vm1732_vm6, %v1622_v17, -inf  ;;  %v1831_v33 = vsel %vm1732_vm6, %v1629_v22, -inf }
 0x194   : > { %v1793_v34 = vmax.f32 %v1791_v14, %v1792_v21  ;;  %v1799_v35 = vrot.slane %v1798_v23, 2  ;;  %v1806_v36 = vrot.slane %v1805_v24, 2  ;;  %v1812_v43 = vmax.f32 %v1810_v19, %v1811_v26 }
 0x195   : > { %v1818_v44 = vrot.slane %v1817_v32, 4  ;;  %v1824_v48 = vsel %vm1732_vm6, %v1630_v28, -inf  ;;  %v1832_v50 = vrot.slane %v1831_v33, 4  ;;  %v1838_v31 = vsel %vm1732_vm6, %v1631_v30, -inf }
 0x196   : > { %v1794_v52 = vrot.slane %v1793_v34, 1  ;;  %v1800_v54 = vmax.f32 %v1798_v23, %v1799_v35  ;;  %v1807_v57 = vmax.f32 %v1805_v24, %v1806_v36  ;;  %v1813_v41 = vrot.slane %v1812_v43, 2 }
 0x197   : > { %v1819_v60 = vmax.f32 %v1817_v32, %v1818_v44  ;;  %v1825_v62 = vrot.slane %v1824_v48, 4  ;;  %v1833_v2 = vmax.f32 %v1831_v33, %v1832_v50  ;;  %v1839_v38 = vrot.slane %v1838_v31, 4 }
 0x198   : > { %v1795_v4 = vmax.f32 %v1793_v34, %v1794_v52  ;;  %v1801_v20 = vrot.slane %v1800_v54, 1  ;;  %v1808_v27 = vrot.slane %v1807_v57, 1  ;;  %v1814_v6 = vmax.f32 %v1812_v43, %v1813_v41 }
 0x199   : > { %v1820_v7 = vrot.slane %v1819_v60, 2  ;;  %v1826_v40 = vmax.f32 %v1824_v48, %v1825_v62  ;;  %v1834_v45 = vrot.slane %v1833_v2, 2  ;;  %v1840_v53 = vmax.f32 %v1838_v31, %v1839_v38 }
 0x19a   : > { %v1802_v3 = vmax.f32 %v1800_v54, %v1801_v20  ;;  %v1809_v0 = vmax.f32 %v1807_v57, %v1808_v27  ;;  %v1815_v9 = vrot.slane %v1814_v6, 1  ;;  %v1957_v10 = vmax.f32 %v3168_v25, %v1795_v4 }
 0x19b   : > { %v1821_v47 = vmax.f32 %v1819_v60, %v1820_v7  ;;  %v1827_v13 = vrot.slane %v1826_v40, 2  ;;  %v1835_v59 = vmax.f32 %v1833_v2, %v1834_v45  ;;  %v1841_v1 = vrot.slane %v1840_v53, 2 }
 0x19c   : > { %v1816_v14 = vmax.f32 %v1814_v6, %v1815_v9  ;;  %v1958_v15 = vmax.f32 %v3172_v42, %v1802_v3  ;;  %v1959_v16 = vmax.f32 %v3174_v39, %v1809_v0  ;;  %v2347_v17 = vpack.c.bf16 %v1957_v10, %v1957_v10 }
 0x19d   : > { %v1822_v19 = vrot.slane %v1821_v47, 1  ;;  %v1828_v22 = vmax.f32 %v1826_v40, %v1827_v13  ;;  %v1836_v21 = vrot.slane %v1835_v59, 1  ;;  %v1842_v23 = vmax.f32 %v1840_v53, %v1841_v1 }
 0x19e   : > { %v1960_v24 = vmax.f32 %v3179_v55, %v1816_v14  ;;  %v2348_v26 = vpack.c.bf16 %v1958_v15, %v1958_v15  ;;  %v2349_v28 = vpack.c.bf16 %v1959_v16, %v1959_v16  ;;  %v2037_v30 = vunpack.c.l.b16 %v2347_v17 }
 0x19f   : > { %v1823_v25 = vmax.f32 %v1821_v47, %v1822_v19  ;;  %v1829_v32 = vrot.slane %v1828_v22, 1  ;;  %v1837_v33 = vmax.f32 %v1835_v59, %v1836_v21  ;;  %v1843_v34 = vrot.slane %v1842_v23, 1 }
 0x1a0   : > { %v2350_v35 = vpack.c.bf16 %v1960_v24, %v1960_v24  ;;  %v2038_v36 = vunpack.c.l.b16 %v2348_v26  ;;  %v2039_v43 = vunpack.c.l.b16 %v2349_v28  ;;  %v1552_v42 = vmax.f32 %v3207_v49, 0.0 }
 0x1a1   : > { %v1830_v39 = vmax.f32 %v1828_v22, %v1829_v32  ;;  %v1844_v44 = vmax.f32 %v1842_v23, %v1843_v34  ;;  %v1961_v48 = vmax.f32 %v3183_v61, %v1823_v25  ;;  %v1963_v50 = vmax.f32 %v3185_v63, %v1837_v33 }
 0x1a2   : > { %v2040_v31 = vunpack.c.l.b16 %v2350_v35  ;;  %v2054_v55 = vsel %vm2053_vm7, %v2038_v36, %v2037_v30  ;;  %v1632_v52 = vcombine.high %v1552_v42, %v1552_v42  ;;  %v1639_v54 = vrot.slane %v1552_v42, %v3142_v12 }
 0x1a3   : > { %v2056_v57 = vsel %vm2055_vm8, %v2039_v43, %v2054_v55  ;;  %v1962_v41 = vmax.f32 %v3190_v51, %v1830_v39  ;;  %v1964_v60 = vmax.f32 %v3192_v5, %v1844_v44  ;;  %v2351_v62 = vpack.c.bf16 %v1961_v48, %v1961_v48 }
 0x1a4   : > { %v2058_v49 = vsel %vm2057_vm9, %v2040_v31, %v2056_v57  ;;  %v1646_v61 = vrot.slane %v1632_v52, %v3142_v12  ;;  %v1647_v2 = vcombine.high %v1639_v54, %v1639_v54  ;;  %v1845_v4 = vsel %vm1732_vm6, %v1639_v54, -inf }
 0x1a5   : > { %v2352_v63 = vpack.c.bf16 %v1962_v41, %v1962_v41  ;;  %v2041_v38 = vunpack.c.l.b16 %v2351_v62  ;;  %v1846_v27 = vrot.slane %v1845_v4, 4  ;;  %v1545_v3 = vadd.f32 %v3210_v56, %v3139_v8 }
 0x1a6   : > { %v1648_v20 = vcombine.high %v1646_v61, %v1646_v61  ;;  %v1852_v6 = vsel %vm1732_vm6, %v1647_v2, -inf  ;;  %v1859_v45 = vsel %vm1732_vm6, %v1646_v61, -inf  ;;  %v2606_v47 = vadd.f32 %v3199_v11, %v3145_v18 }
 0x1a7   : > { %v2042_v7 = vunpack.c.l.b16 %v2352_v63  ;;  %v2060_v51 = vsel %vm2059_vm10, %v2041_v38, %v2058_v49  ;;  %v1853_v40 = vrot.slane %v1852_v6, 4  ;;  %v1847_v5 = vmax.f32 %v1845_v4, %v1846_v27 }
 0x1a8   : > { %v1866_v53 = vsel %vm1732_vm6, %v1648_v20, -inf  ;;  %v1860_v9 = vrot.slane %v1859_v45, 4  ;;  %v1553_v13 = vmax.f32 %v1545_v3, 0.0  ;;  %v2507_v59 = vadd.f32 %v3177_v46, %v3170_v37 }
 0x1a9   : > { %v1854_v0 = vmax.f32 %v1852_v6, %v1853_v40  ;;  %v1867_v10 = vrot.slane %v1866_v53, 4  ;;  %v2062_v1 = vsel %vm2061_vm11, %v2042_v7, %v2060_v51  ;;  %v1848_v14 = vrot.slane %v1847_v5, 2 }
 0x1aa   : > { %v1861_v15 = vmax.f32 %v1859_v45, %v1860_v9  ;;  %v1546_v17 = vadd.f32 %v2606_v47, %v3139_v8  ;;  %v1649_v19 = vcombine.high %v1553_v13, %v1553_v13  ;;  %v1656_v56 = vrot.slane %v1553_v13, %v3142_v12 }
 0x1ab   : > { %v1868_v16 = vmax.f32 %v1866_v53, %v1867_v10  ;;  %v2611_v22 = vadd.f32 %v3132_v58, %v2507_v59  ;;  %v2353_v21 = vpack.c.bf16 %v1963_v50, %v1963_v50  ;;  %v1855_v23 = vrot.slane %v1854_v0, 2 }
 0x1ac   : > { %v1862_v24 = vrot.slane %v1861_v15, 2  ;;  %v1663_v18 = vrot.slane %v1649_v19, %v3142_v12  ;;  %v1664_v11 = vcombine.high %v1656_v56, %v1656_v56  ;;  %v1873_v37 = vsel %vm1732_vm6, %v1656_v56, -inf }
 0x1ad   : > { %v1554_v46 = vmax.f32 %v1546_v17, 0.0  ;;  %v2354_v26 = vpack.c.bf16 %v1964_v60, %v1964_v60  ;;  %v1849_v28 = vmax.f32 %v1847_v5, %v1848_v14  ;;  %v1869_v30 = vrot.slane %v1868_v16, 2 }
 0x1ae   : > { %v1874_v25 = vrot.slane %v1873_v37, 4  ;;  %v1665_v32 = vcombine.high %v1663_v18, %v1663_v18  ;;  %v1880_v33 = vsel %vm1732_vm6, %v1664_v11, -inf  ;;  %v1856_v34 = vmax.f32 %v1854_v0, %v1855_v23 }
 0x1af   : > { %v1887_v58 = vsel %vm1732_vm6, %v1663_v18, -inf  ;;  %v1863_v36 = vmax.f32 %v1861_v15, %v1862_v24  ;;  %v1881_v43 = vrot.slane %v1880_v33, 4  ;;  %v1666_v39 = vcombine.high %v1554_v46, %v1554_v46 }
 0x1b0   : > { %v1875_v35 = vmax.f32 %v1873_v37, %v1874_v25  ;;  %v1894_v42 = vsel %vm1732_vm6, %v1665_v32, -inf  ;;  %v2043_v44 = vunpack.c.l.b16 %v2353_v21  ;;  %v2044_v48 = vunpack.c.l.b16 %v2354_v26 }
 0x1b1   : > { %v1850_v50 = vrot.slane %v1849_v28, 1  ;;  %v1870_v31 = vmax.f32 %v1868_v16, %v1869_v30  ;;  %v1888_v52 = vrot.slane %v1887_v58, 4  ;;  %v1673_v54 = vrot.slane %v1554_v46, %v3142_v12 }
 0x1b2   : > { %v1876_v55 = vrot.slane %v1875_v35, 2  ;;  %v1680_v57 = vrot.slane %v1666_v39, %v3142_v12  ;;  %v1857_v41 = vrot.slane %v1856_v34, 1  ;;  %v1895_v60 = vrot.slane %v1894_v42, 4 }
 0x1b3   : > { %v2612_v62 = vadd.f32 %v2611_v22, %v3150_v29  ;;  %v2064_v49 = vsel %vm2063_vm12, %v2043_v44, %v2062_v1  ;;  %v1864_v61 = vrot.slane %v1863_v36, 1  ;;  %v1882_v2 = vmax.f32 %v1880_v33, %v1881_v43 }
 0x1b4   : > { %v1681_v63 = vcombine.high %v1673_v54, %v1673_v54  ;;  %v1682_v38 = vcombine.high %v1680_v57, %v1680_v57  ;;  %v1851_v4 = vmax.f32 %v1849_v28, %v1850_v50  ;;  %v1871_v20 = vrot.slane %v1870_v31, 1 }
 0x1b5   : > { %v1901_v27 = vsel %vm1732_vm6, %v1673_v54, -inf  ;;  %v1915_v6 = vsel %vm1732_vm6, %v1680_v57, -inf  ;;  %v3256_v7 = vmax.f32 %v1875_v35, %v1876_v55  ;;  %v1889_v51 = vmax.f32 %v1887_v58, %v1888_v52 }
 0x1b6   : > { %v1902_v40 = vrot.slane %v1901_v27, 4  ;;  %v1908_v5 = vsel %vm1732_vm6, %v1681_v63, -inf  ;;  %v1858_v29 = vmax.f32 %v1856_v34, %v1857_v41  ;;  %v1896_v45 = vmax.f32 %v1894_v42, %v1895_v60 }
 0x1b7   : > { %v1909_v53 = vrot.slane %v1908_v5, 4  ;;  %v1916_v3 = vrot.slane %v1915_v6, 4  ;;  %v1865_v0 = vmax.f32 %v1863_v36, %v1864_v61  ;;  %v1883_v9 = vrot.slane %v1882_v2, 2 }
 0x1b8   : > { %v1903_v10 = vmax.f32 %v1901_v27, %v1902_v40  ;;  %v1922_v47 = vsel %vm1732_vm6, %v1682_v38, -inf  ;;  %v1872_v13 = vmax.f32 %v1870_v31, %v1871_v20  ;;  %v1878_v15 = vrot.slane %v3256_v7, 1 }
 0x1b9   : > { %v1910_v59 = vmax.f32 %v1908_v5, %v1909_v53  ;;  %v1917_v1 = vmax.f32 %v1915_v6, %v1916_v3  ;;  %v1923_v14 = vrot.slane %v1922_v47, 4  ;;  %v1890_v16 = vrot.slane %v1889_v51, 2 }
 0x1ba   : > { %v1904_v17 = vrot.slane %v1903_v10, 2  ;;  %v1547_v19 = vadd.f32 %v2612_v62, %v3139_v8  ;;  %v1897_v56 = vrot.slane %v1896_v45, 2  ;;  %v3265_v24 = vmax.f32 %v1882_v2, %v1883_v9 }
 0x1bb   : > { %v1911_v22 = vrot.slane %v1910_v59, 2  ;;  %v1918_v21 = vrot.slane %v1917_v1, 2  ;;  %v1924_v23 = vmax.f32 %v1922_v47, %v1923_v14  ;;  %v2066_v37 = vsel %vm2065_vm13, %v2044_v48, %v2064_v49 }
 0x1bc   : > { %v1905_v18 = vmax.f32 %v1903_v10, %v1904_v17  ;;  %v1555_v11 = vmax.f32 %v1547_v19, 0.0  ;;  %v2074_v30 = vpack.c.b16 %v2066_v37, %v2066_v37  ;;  %v3268_v25 = vmax.f32 %v1889_v51, %v1890_v16 }
 0x1bd   : > { %v1912_v46 = vmax.f32 %v1910_v59, %v1911_v22  ;;  %v1919_v26 = vmax.f32 %v1917_v1, %v1918_v21  ;;  %v1925_v28 = vrot.slane %v1924_v23, 2  ;;  %v3271_v34 = vmax.f32 %v1896_v45, %v1897_v56 }
 0x1be   : > { %v1906_v32 = vrot.slane %v1905_v18, 1  ;;  %v1683_v33 = vcombine.high %v1555_v11, %v1555_v11  ;;  %v1690_v8 = vrot.slane %v1555_v11, %v3142_v12  ;;  %2078 = vst [vmem:[%s3273_s26] sm:$0xf] %v2074_v30  ;;  %v1892_v1 = vrot.slane %v3268_v25, 1 }
 0x1bf   : > { %v1913_v35 = vrot.slane %v1912_v46, 1  ;;  %v1920_v58 = vrot.slane %v1919_v26, 1  ;;  %v1926_v36 = vmax.f32 %v1924_v23, %v1925_v28  ;;  %v1879_v21 = vmax.f32 %v3256_v7, %v1878_v15 }
 0x1c0   : > { %v1907_v43 = vmax.f32 %v1905_v18, %v1906_v32  ;;  %v1697_v42 = vrot.slane %v1683_v33, %v3142_v12  ;;  %v1698_v39 = vcombine.high %v1690_v8, %v1690_v8  ;;  %v1929_v44 = vsel %vm1732_vm6, %v1690_v8, -inf }
 0x1c1   : > { %v1914_v48 = vmax.f32 %v1912_v46, %v1913_v35  ;;  %v1921_v50 = vmax.f32 %v1919_v26, %v1920_v58  ;;  %v1927_v31 = vrot.slane %v1926_v36, 1  ;;  %v1930_v55 = vrot.slane %v1929_v44, 4 }
 0x1c2   : > { %v1965_v52 = vmax.f32 %v1851_v4, %v1907_v43  ;;  %v1699_v54 = vcombine.high %v1697_v42, %v1697_v42  ;;  %v1936_v57 = vsel %vm1732_vm6, %v1698_v39, -inf  ;;  %v1943_v41 = vsel %vm1732_vm6, %v1697_v42, -inf }
 0x1c3   : > { %v1928_v60 = vmax.f32 %v1926_v36, %v1927_v31  ;;  %v1966_v62 = vmax.f32 %v1858_v29, %v1914_v48  ;;  %v1967_v49 = vmax.f32 %v1865_v0, %v1921_v50  ;;  %v1931_v61 = vmax.f32 %v1929_v44, %v1930_v55 }
 0x1c4   : > { %v2355_v2 = vpack.c.bf16 %v1965_v52, %v1965_v52  ;;  %v1937_v63 = vrot.slane %v1936_v57, 4  ;;  %v1944_v12 = vrot.slane %v1943_v41, 4  ;;  %v1950_v38 = vsel %vm1732_vm6, %v1699_v54, -inf }
 0x1c5   : > { %v1968_v20 = vmax.f32 %v1872_v13, %v1928_v60  ;;  %v2356_v27 = vpack.c.bf16 %v1966_v62, %v1966_v62  ;;  %v2357_v6 = vpack.c.bf16 %v1967_v49, %v1967_v49  ;;  %v1932_v51 = vrot.slane %v1931_v61, 2 }
 0x1c6   : > { %v2045_v40 = vunpack.c.l.b16 %v2355_v2  ;;  %v1938_v4 = vmax.f32 %v1936_v57, %v1937_v63  ;;  %v1945_v5 = vmax.f32 %v1943_v41, %v1944_v12  ;;  %v1951_v45 = vrot.slane %v1950_v38, 4 }
 0x1c7   : > { %v2358_v53 = vpack.c.bf16 %v1968_v20, %v1968_v20  ;;  %v2046_v3 = vunpack.c.l.b16 %v2356_v27  ;;  %v2047_v9 = vunpack.c.l.b16 %v2357_v6  ;;  %v1933_v10 = vmax.f32 %v1931_v61, %v1932_v51 }
 0x1c8   : > { %v1885_v29 = vrot.slane %v3265_v24, 1  ;;  %v1939_v0 = vrot.slane %v1938_v4, 2  ;;  %v1946_v47 = vrot.slane %v1945_v5, 2  ;;  %v1952_v59 = vmax.f32 %v1950_v38, %v1951_v45 }
 0x1c9   : > { %v2048_v14 = vunpack.c.l.b16 %v2358_v53  ;;  %v2067_v13 = vsel %vm2053_vm7, %v2046_v3, %v2045_v40  ;;  %v1934_v16 = vrot.slane %v1933_v10, 1  ;;  %v1899_v11 = vrot.slane %v3271_v34, 1 }
 0x1ca   : > { %v2068_v17 = vsel %vm2055_vm8, %v2047_v9, %v2067_v13  ;;  %v1940_v19 = vmax.f32 %v1938_v4, %v1939_v0  ;;  %v1947_v56 = vmax.f32 %v1945_v5, %v1946_v47  ;;  %v1953_v22 = vrot.slane %v1952_v59, 2 }
 0x1cb   : > { %v1935_v23 = vmax.f32 %v1933_v10, %v1934_v16  ;;  %v2069_v18 = vsel %vm2057_vm9, %v2048_v14, %v2068_v17  ;;  %v1886_v28 = vmax.f32 %v3265_v24, %v1885_v29  ;;  %v1893_v32 = vmax.f32 %v3268_v25, %v1892_v1 }
 0x1cc   : > { %v1941_v37 = vrot.slane %v1940_v19, 1  ;;  %v1948_v46 = vrot.slane %v1947_v56, 1  ;;  %v1954_v26 = vmax.f32 %v1952_v59, %v1953_v22  ;;  %v1900_v7 = vmax.f32 %v3271_v34, %v1899_v11 }
 0x1cd   : > { %v1969_v30 = vmax.f32 %v1879_v21, %v1935_v23 }
 0x1ce   : > { %v1942_v33 = vmax.f32 %v1940_v19, %v1941_v37  ;;  %v1949_v8 = vmax.f32 %v1947_v56, %v1948_v46  ;;  %v1955_v35 = vrot.slane %v1954_v26, 1 }
 0x1cf   : > { %v2359_v58 = vpack.c.bf16 %v1969_v30, %v1969_v30 }
 0x1d0   : > { %v1956_v15 = vmax.f32 %v1954_v26, %v1955_v35  ;;  %v1970_v36 = vmax.f32 %v1886_v28, %v1942_v33  ;;  %v1971_v43 = vmax.f32 %v1893_v32, %v1949_v8 }
 0x1d1   : > { %v2049_v42 = vunpack.c.l.b16 %v2359_v58 }
 0x1d2   : > { %v1972_v39 = vmax.f32 %v1900_v7, %v1956_v15  ;;  %v2360_v44 = vpack.c.bf16 %v1970_v36, %v1970_v36  ;;  %v2361_v24 = vpack.c.bf16 %v1971_v43, %v1971_v43 }
 0x1d3   : > { %v2070_v48 = vsel %vm2059_vm10, %v2049_v42, %v2069_v18 }
 0x1d4   : > { %v2362_v25 = vpack.c.bf16 %v1972_v39, %v1972_v39  ;;  %v2050_v50 = vunpack.c.l.b16 %v2360_v44  ;;  %v2051_v31 = vunpack.c.l.b16 %v2361_v24 }
 0x1d6   : > { %v2052_v55 = vunpack.c.l.b16 %v2362_v25  ;;  %v2071_v34 = vsel %vm2061_vm11, %v2050_v50, %v2070_v48 }
 0x1d7   : > { %v2072_v52 = vsel %vm2063_vm12, %v2051_v31, %v2071_v34 }
 0x1d8   : > { %v2073_v54 = vsel %vm2065_vm13, %v2052_v55, %v2072_v52 }
 0x1d9   : > { %v2075_v57 = vpack.c.b16 %v2073_v54, %v2073_v54 }
 0x1db   : > { %2079 = vst [vmem:[%s3273_s26 + $0x4] sm:$0xf] %v2075_v57 }
 0x1dc   : > { %2822 = shalt.err (!%p2819_p7)
}
 0x1dd   : > { %s2823_s12 = scalar_lea.hbm %s3302_s7, 128  ;;  %s2827_s21 = scalar_lea.hbm %s3359_s4, 512 }
 0x1de   : > { %p2824_p9 = scmp.ne.s32.totalorder %s3302_s7, %s2823_s12  ;;  %p2828_p2 = scmp.lt.u32.totalorder %s3302_s7, %s3359_s4 }
 0x1df   : > { %p2829_p4 = scmp.lt.u32.totalorder %s2827_s21, %s2823_s12  ;;  %p2831_p10 = scmp.lt.u32.totalorder %s2823_s12, %s3302_s7 }
 0x1e0   : > { %p2825_p12 = pnand %p2824_p9, %p3375_p11 }
 0x1e1   : > { %p2830_p8 = por %p2829_p4, %p2828_p2 }
 0x1e2   : > { %p2826_p0 = pneg %p2825_p12 }
 0x1e3   : > { %p2832_p13 = por %p2831_p10, %p2830_p8 }
 0x1e5   : > { %p2833_p1 = pnand %p2832_p13, %p2826_p0 }
 0x1e7   : > { %2836 = shalt.err (!%p2833_p1)
}
 0x1e8   : > { %s2898_s26 = smov 64   ;;  %s2899_s5 = smov 4  }
 0x1e9   : > { %2636 = dma.vmem_to_hbm [thread:$0]  (%p3375_p11), %s3304_s29, 128, %s3302_s7, %s3309_s18, %s2898_s26, %s2898_s26, %s2899_s5  }
 0x1ea PF: > { %p2648_p3 = scmp.ge.s32.totalorder %s2891_s20, 2  ;;  %s2112_s30 = sand.u32 1, %s2871_s15  }
 0x1eb   : > { %p3376_p5 = scmp.ne.s32.totalorder %s3365_s27, 0  ;;  %s2113_s6 = scalar_lea.sflag [#allocation6], %s2112_s30 }
 0x1ed   : > { %p2643_p6 = pnand %p2648_p3, %p3376_p5 }
 0x1ef   : > { %2866 = dma.done.wait (!%p2643_p6), %s2113_s6, 128  }
 0x1f0   : > { %2868 = vsyncadd (!%p2643_p6), %s2113_s6, 4294967168  ;;  %s18_s20 = sadd.s32 1, %s2891_s20   ;;  %s3377_s15 = smov %s2875_s16 }
 0x1f1   : > { %p15_p7 = scmp.ge.s32.totalorder %s18_s20, 6   ;;  %s3378_s16 = smov %s2879_s17 }
 0x1f2   : > { %s3379_s17 = smov %s2978_s28  ;;  %s3380_s18 = smov %s2887_s19 }
 0x1f3   : > { %s3381_s19 = smov %s3383_s23  ;;  %17 = sbr.rel (!%p15_p7) target bundleno = 5 (0x5), region = 85 }
 0x1fa   :  { %2118 = vsyncpa [#allocation5], 1 }
 0x1fb   :  { %2120 = vsyncpa [#allocation5 + $0x1], 1 }
 0x1fc   :  { %2121 = vsyncpa [#allocation6], 1 }
 0x1fd   :  { %2123 = vsyncpa [#allocation6 + $0x1], 1 }

</bundles_post_ra>
